<compile_context>
chip_gen: v7x
topology: tpu7x:2x2x1
jax: 0.10.0
libtpu: 0.0.40
codegen_flags: <defaults>
</compile_context>

<pallas_src>
import functools

import jax
import jax.numpy as jnp
import numpy as np
from jax.experimental import pallas as pl
from jax.experimental.pallas import tpu as pltpu

EPS = 1e-5                      # torch.nn.LayerNorm default
VMEM_LIMIT = 64 * 1024 * 1024   # explicit scoped-VMEM limit for all calls


def _layernorm(x, w, b):
    mu = jnp.mean(x, axis=-1, keepdims=True)
    var = jnp.mean((x - mu) ** 2, axis=-1, keepdims=True)
    return (x - mu) * jax.lax.rsqrt(var + EPS) * w + b


def _pick_tile(m, target=512):
    """Largest row-tile (multiple of 8, <= target) dividing m; else whole m."""
    for t in (target, 256, 128, 64, 32, 16, 8):
        if t <= m and m % t == 0:
            return t
    # TODO(synk): pad M to a multiple of 8 instead of whole-array fallback for
    # odd N_res where N*N has no power-of-two factor.
    return m


# ----------------------------------------------------------------------------
# Kernel 1: LayerNorm + fused projection/gate/gating_linear matmul + mask.
# Emits left|right triangle operands channel-major [2c, tm] and gate row-major.
# ----------------------------------------------------------------------------
def pre_kernel(act_ref, mask_ref, ln_w_ref, ln_b_ref, w_all_ref, b_all_ref,
               lr_ref, gate_ref, *, c):
    x = act_ref[...].astype(jnp.float32)                        # [tm, cz]
    norm = _layernorm(x, ln_w_ref[...], ln_b_ref[...])          # f32

    # One MXU matmul for projection (2c) | gate (2c) | gating_linear (cz).
    z = jnp.dot(norm.astype(jnp.bfloat16), w_all_ref[...],
                preferred_element_type=jnp.float32) + b_all_ref[...]   # [tm, 4c+cz]

    p = mask_ref[...] * z[:, :2 * c]                            # masked projection
    g = jax.nn.sigmoid(z[:, 2 * c:4 * c])                       # projection gate
    pg = p * g                                                  # [tm, 2c]

    # Channel-major (single VMEM-local transpose) so the triangle kernel reads
    # its operands in the layout it consumes — no XLA transposes afterwards.
    lr_ref[...] = pg.T.astype(lr_ref.dtype)                     # [2c, tm]

    gate_ref[...] = jax.nn.sigmoid(z[:, 4 * c:]).astype(gate_ref.dtype)  # [tm, cz]


# ----------------------------------------------------------------------------
# Kernel 2: triangle contraction, BC channels (batch dim) per grid step.
#   outgoing 'ikc,jkc->ijc':  a=left  [BC,i,k], b=right [BC,j,k]
#   incoming 'kjc,kic->ijc':  a=right [BC,k,i], b=left  [BC,k,j]
# Expressed with dot_general contracting dims (via einsum) — no .T in kernel.
# ----------------------------------------------------------------------------
def tri_kernel(a_ref, b_ref, o_ref, *, outgoing):
    a = a_ref[...]
    b = b_ref[...]
    if outgoing:
        o = jnp.einsum('cik,cjk->cij', a, b,
                       preferred_element_type=jnp.float32)
    else:
        o = jnp.einsum('cki,ckj->cij', a, b,
                       preferred_element_type=jnp.float32)
    o_ref[...] = o.astype(o_ref.dtype)


# ----------------------------------------------------------------------------
# Kernel 3: center LayerNorm + output projection + final sigmoid gating.
# Consumes the triangle result channel-major (transpose stays in VMEM).
# ----------------------------------------------------------------------------
def post_kernel(tri_ref, gate_ref, cn_w_ref, cn_b_ref,
                out_w_ref, out_b_ref, o_ref):
    t = tri_ref[...].astype(jnp.float32).T                      # [tm, c]
    cn = _layernorm(t, cn_w_ref[...], cn_b_ref[...])
    o = jnp.dot(cn.astype(jnp.bfloat16), out_w_ref[...],
                preferred_element_type=jnp.float32) + out_b_ref[...]   # [tm, cz]
    o_ref[...] = (o * gate_ref[...].astype(jnp.float32)).astype(o_ref.dtype)


# ----------------------------------------------------------------------------
# Wrapper
# ----------------------------------------------------------------------------
def fused_triangle_multiplication(act, mask, params, equation='ikc,jkc->ijc'):
    N, N2, cz = act.shape
    assert N == N2
    c2 = params['projection_w'].shape[0]
    c = c2 // 2
    # The module's gate/gating_linear consume the cz-wide normed input,
    # so act_dim must equal num_intermediate_channel.
    assert params['gate_w'].shape[1] == cz
    M = N * N
    tm = _pick_tile(M)
    grid_m = M // tm
    kw = 4 * c + cz

    f32, bf16 = jnp.float32, jnp.bfloat16

    def t(w):          # PyTorch Linear weight [out, in] -> [in, out]
        return jnp.asarray(w, f32).T

    def row(b):
        return jnp.asarray(b, f32).reshape(1, -1)

    act2 = act.reshape(M, cz).astype(f32)
    mask2 = mask.reshape(M, 1).astype(f32)

    # Fused weight: projection | gate | gating_linear (one MXU load per tile).
    w_all = jnp.concatenate(
        [t(params['projection_w']), t(params['gate_w']),
         t(params['gating_linear_w'])], axis=1).astype(bf16)           # [cz, kw]
    b_all = jnp.concatenate(
        [jnp.asarray(params['projection_b'], f32),
         jnp.asarray(params['gate_b'], f32),
         jnp.asarray(params['gating_linear_b'], f32)]).reshape(1, -1)  # [1, kw]

    const = lambda *shape: pl.BlockSpec(shape, lambda i: tuple(0 for _ in shape))

    # ---------------- Stage 1: pre ----------------
    pre_call = pl.pallas_call(
        functools.partial(pre_kernel, c=c),
        out_shape=(jax.ShapeDtypeStruct((2 * c, M), bf16),  # left|right, chan-major
                   jax.ShapeDtypeStruct((M, cz), bf16)),    # final gate values
        grid=(grid_m,),
        in_specs=[
            pl.BlockSpec((tm, cz), lambda i: (i, 0)),       # act rows
            pl.BlockSpec((tm, 1), lambda i: (i, 0)),        # mask rows
            const(1, cz), const(1, cz),                     # left_norm_input w/b
            const(cz, kw), const(1, kw),                    # fused weight / bias
        ],
        out_specs=(pl.BlockSpec((2 * c, tm), lambda i: (0, i)),
                   pl.BlockSpec((tm, cz), lambda i: (i, 0))),
        compiler_params=pltpu.CompilerParams(
            dimension_semantics=("parallel",),
            vmem_limit_bytes=VMEM_LIMIT),
        cost_estimate=pl.CostEstimate(
            flops=2 * M * cz * kw,
            transcendentals=M * (2 * c + cz),
            bytes_accessed=4 * M * (cz + 1) + 2 * M * (2 * c + cz) + 2 * cz * kw),
    )
    lr_cm, gate_vals = pre_call(act2, mask2,
                                row(params['ln_w']), row(params['ln_b']),
                                w_all, b_all)

    # Free reshape only (contiguous) — no relayouts between stages.
    lr3 = lr_cm.reshape(2 * c, N, N)      # rows [0,c)=left[c,i,k], [c,2c)=right

    # ---------------- Stage 2: triangle contraction ----------------
    outgoing = (equation == 'ikc,jkc->ijc')
    # Channel-group size: amortize per-step overhead, stay within a ~20 MiB
    # working set (3 arrays x bf16 x double buffer) so tiles also fit v7x VMEM.
    bc_budget = max(1, (20 * 1024 * 1024) // (3 * 2 * 2 * N * N))
    BC = next(b for b in (16, 8, 4, 2, 1) if b <= bc_budget and c % b == 0)
    # TODO(synk): K-tile the per-channel contraction (grid (c//BC, N//tk) with
    # a VMEM accumulator) for N_res large enough that even BC=1 exceeds VMEM.

    nblk = c // BC
    # outgoing:  a = left  (block offset 0),    b = right (block offset nblk)
    # incoming:  a = right (block offset nblk), b = left  (block offset 0)
    a_off = 0 if outgoing else nblk
    b_off = nblk if outgoing else 0

    tri_call = pl.pallas_call(
        functools.partial(tri_kernel, outgoing=outgoing),
        out_shape=jax.ShapeDtypeStruct((c, N, N), bf16),
        grid=(nblk,),
        in_specs=[pl.BlockSpec((BC, N, N), lambda g, o=a_off: (g + o, 0, 0)),
                  pl.BlockSpec((BC, N, N), lambda g, o=b_off: (g + o, 0, 0))],
        out_specs=pl.BlockSpec((BC, N, N), lambda g: (g, 0, 0)),
        compiler_params=pltpu.CompilerParams(
            dimension_semantics=("parallel",),
            vmem_limit_bytes=VMEM_LIMIT),
        cost_estimate=pl.CostEstimate(
            flops=2 * c * N * N * N,
            transcendentals=0,
            bytes_accessed=3 * c * N * N * 2),
    )
    # Same slab passed twice; the BlockSpec index maps pick left vs right.
    tri_cm = tri_call(lr3, lr3)
    tri_flat = tri_cm.reshape(c, M)       # free reshape, stays channel-major

    # ---------------- Stage 3: post ----------------
    post_call = pl.pallas_call(
        post_kernel,
        out_shape=jax.ShapeDtypeStruct((M, cz), f32),
        grid=(grid_m,),
        in_specs=[
            pl.BlockSpec((c, tm), lambda i: (0, i)),       # triangle result (cm)
            pl.BlockSpec((tm, cz), lambda i: (i, 0)),      # gate values
            const(1, c), const(1, c),                      # center_norm w/b
            const(c, cz), const(1, cz),                    # output_projection w/b
        ],
        out_specs=pl.BlockSpec((tm, cz), lambda i: (i, 0)),
        compiler_params=pltpu.CompilerParams(
            dimension_semantics=("parallel",),
            vmem_limit_bytes=VMEM_LIMIT),
        cost_estimate=pl.CostEstimate(
            flops=2 * M * c * cz,
            transcendentals=0,
            bytes_accessed=2 * M * c + 2 * M * cz + 4 * M * cz + 2 * c * cz),
    )
    out = post_call(tri_flat, gate_vals,
                    row(params['center_norm_w']), row(params['center_norm_b']),
                    t(params['output_projection_w']).astype(bf16),
                    row(params['output_projection_b']))
    return out.reshape(N, N, cz).astype(act.dtype)


# ----------------------------------------------------------------------------
# Pure-JAX f32 reference (mirrors the fused AlphaFold TriangleMultiplication)
# ----------------------------------------------------------------------------
def reference(act, mask, p, equation):
    norm = _layernorm(act, p['ln_w'], p['ln_b'])
    proj = norm @ p['projection_w'].T + p['projection_b']
    proj = mask[..., None] * proj
    proj = proj * jax.nn.sigmoid(norm @ p['gate_w'].T + p['gate_b'])
    c = p['center_norm_w'].shape[0]
    left, right = proj[..., :c], proj[..., c:]
    tri = jnp.einsum(equation, left, right)
    cn = _layernorm(tri, p['center_norm_w'], p['center_norm_b'])
    out = cn @ p['output_projection_w'].T + p['output_projection_b']
    gate_vals = jax.nn.sigmoid(norm @ p['gating_linear_w'].T + p['gating_linear_b'])
    return out * gate_vals


if __name__ == "__main__":
    # Small shapes: N_res = 16, act_dim = num_intermediate_channel = 32.
    N = 16
    act_dim = 32
    nic = 32  # must equal act_dim (module's gate Linear consumes the normed act)

    key = jax.random.PRNGKey(0)
    ks = jax.random.split(key, 16)

    act = jax.random.normal(ks[0], (N, N, act_dim), jnp.float32)
    mask = (jax.random.uniform(ks[1], (N, N)) > 0.2).astype(jnp.float32)

    params = {
        'ln_w': 1.0 + 0.1 * jax.random.normal(ks[2], (act_dim,), jnp.float32),
        'ln_b': 0.1 * jax.random.normal(ks[3], (act_dim,), jnp.float32),
        'projection_w': 0.1 * jax.random.normal(ks[4], (2 * nic, act_dim), jnp.float32),
        'projection_b': 0.1 * jax.random.normal(ks[5], (2 * nic,), jnp.float32),
        'gate_w': 0.1 * jax.random.normal(ks[6], (2 * nic, nic), jnp.float32),
        'gate_b': 0.1 * jax.random.normal(ks[7], (2 * nic,), jnp.float32),
        'center_norm_w': 1.0 + 0.1 * jax.random.normal(ks[8], (nic,), jnp.float32),
        'center_norm_b': 0.1 * jax.random.normal(ks[9], (nic,), jnp.float32),
        'output_projection_w': 0.1 * jax.random.normal(ks[10], (act_dim, nic), jnp.float32),
        'output_projection_b': 0.1 * jax.random.normal(ks[11], (act_dim,), jnp.float32),
        'gating_linear_w': 0.1 * jax.random.normal(ks[12], (act_dim, act_dim), jnp.float32),
        'gating_linear_b': 0.1 * jax.random.normal(ks[13], (act_dim,), jnp.float32),
    }

    ok = True
    max_err = 0.0
    for eq in ('ikc,jkc->ijc', 'kjc,kic->ijc'):
        out = fused_triangle_multiplication(act, mask, params, equation=eq)
        out = jax.block_until_ready(out)
        ref = reference(act, mask, params, eq)
        o_np, r_np = np.asarray(out), np.asarray(ref)
        max_err = max(max_err, float(np.max(np.abs(o_np - r_np))))
        # bf16 MXU operands / intermediates (f32 accumulation) -> bf16-level tol.
        ok &= bool(np.allclose(o_np, r_np, rtol=3e-2, atol=3e-2))

    if ok:
        print("KERNEL_OK")
    else:
        raise SystemExit(f"mismatch vs reference (max abs err {max_err:.3e})")
</pallas_src>

<mosaic_0001>
module attributes {stable_mosaic.version = 11 : i64} {
  func.func @pre_kernel(%arg0: i32, %arg1: memref<256x32xf32, #tpu.memory_space<vmem>>, %arg2: memref<256x1xf32, #tpu.memory_space<vmem>>, %arg3: memref<1x32xf32, #tpu.memory_space<vmem>>, %arg4: memref<1x32xf32, #tpu.memory_space<vmem>>, %arg5: memref<32x160xbf16, #tpu.memory_space<vmem>>, %arg6: memref<1x160xf32, #tpu.memory_space<vmem>>, %arg7: memref<64x256xbf16, #tpu.memory_space<vmem>>, %arg8: memref<256x32xbf16, #tpu.memory_space<vmem>>) attributes {dimension_semantics = [#tpu.dimension_semantics<parallel>], iteration_bounds = array<i64: 1>, scalar_prefetch = 0 : i64, scratch_operands = 0 : i64, tpu.core_type = #tpu.core_type<tc>, window_params = [{transform_indices = @transform_0, window_bounds = array<i64: 256, 32>}, {transform_indices = @transform_1, window_bounds = array<i64: 256, 1>}, {pipeline_mode = #tpu.pipeline_mode<synchronous>, transform_indices = @transform_2, window_bounds = array<i64: 1, 32>}, {pipeline_mode = #tpu.pipeline_mode<synchronous>, transform_indices = @transform_3, window_bounds = array<i64: 1, 32>}, {pipeline_mode = #tpu.pipeline_mode<synchronous>, transform_indices = @transform_4, window_bounds = array<i64: 32, 160>}, {pipeline_mode = #tpu.pipeline_mode<synchronous>, transform_indices = @transform_5, window_bounds = array<i64: 1, 160>}, {transform_indices = @transform_6, window_bounds = array<i64: 64, 256>}, {transform_indices = @transform_7, window_bounds = array<i64: 256, 32>}]} {
    %c0 = arith.constant 0 : index
    %c0_0 = arith.constant 0 : index
    %0 = vector.load %arg1[%c0, %c0_0] : memref<256x32xf32, #tpu.memory_space<vmem>>, vector<256x32xf32>
    %c0_1 = arith.constant 0 : index
    %c0_2 = arith.constant 0 : index
    %1 = vector.load %arg3[%c0_1, %c0_2] : memref<1x32xf32, #tpu.memory_space<vmem>>, vector<1x32xf32>
    %c0_3 = arith.constant 0 : index
    %c0_4 = arith.constant 0 : index
    %2 = vector.load %arg4[%c0_3, %c0_4] : memref<1x32xf32, #tpu.memory_space<vmem>>, vector<1x32xf32>
    %cst = arith.constant dense<0.000000e+00> : vector<256xf32>
    %3 = vector.multi_reduction <add>, %0, %cst [1] : vector<256x32xf32> to vector<256xf32>
    %4 = vector.shape_cast %3 : vector<256xf32> to vector<256x1xf32>
    %cst_5 = arith.constant 3.200000e+01 : f32
    %5 = vector.broadcast %cst_5 : f32 to vector<256x1xf32>
    %6 = arith.divf %4, %5 : vector<256x1xf32>
    %7 = vector.broadcast %6 : vector<256x1xf32> to vector<256x32xf32>
    %8 = arith.subf %0, %7 : vector<256x32xf32>
    %9 = arith.mulf %8, %8 : vector<256x32xf32>
    %cst_6 = arith.constant dense<0.000000e+00> : vector<256xf32>
    %10 = vector.multi_reduction <add>, %9, %cst_6 [1] : vector<256x32xf32> to vector<256xf32>
    %11 = vector.shape_cast %10 : vector<256xf32> to vector<256x1xf32>
    %cst_7 = arith.constant 3.200000e+01 : f32
    %12 = vector.broadcast %cst_7 : f32 to vector<256x1xf32>
    %13 = arith.divf %11, %12 : vector<256x1xf32>
    %14 = vector.broadcast %6 : vector<256x1xf32> to vector<256x32xf32>
    %15 = arith.subf %0, %14 : vector<256x32xf32>
    %cst_8 = arith.constant 9.99999974E-6 : f32
    %16 = vector.broadcast %cst_8 : f32 to vector<256x1xf32>
    %17 = arith.addf %13, %16 : vector<256x1xf32>
    %18 = math.rsqrt %17 : vector<256x1xf32>
    %19 = vector.broadcast %18 : vector<256x1xf32> to vector<256x32xf32>
    %20 = arith.mulf %15, %19 : vector<256x32xf32>
    %21 = vector.broadcast %1 : vector<1x32xf32> to vector<256x32xf32>
    %22 = arith.mulf %20, %21 : vector<256x32xf32>
    %23 = vector.broadcast %2 : vector<1x32xf32> to vector<256x32xf32>
    %24 = arith.addf %22, %23 : vector<256x32xf32>
    %25 = arith.truncf %24 : vector<256x32xf32> to vector<256x32xbf16>
    %c0_9 = arith.constant 0 : index
    %c0_10 = arith.constant 0 : index
    %26 = vector.load %arg5[%c0_9, %c0_10] : memref<32x160xbf16, #tpu.memory_space<vmem>>, vector<32x160xbf16>
    %cst_11 = arith.constant dense<0.000000e+00> : vector<256x160xf32>
    %27 = tpu.matmul %25, %26, %cst_11 {dimension_numbers = #tpu.dot_dimension_numbers<[1], [0], [0], [1], [0, 0, 1, 1], [], []>} : vector<256x32xbf16>, vector<32x160xbf16>, vector<256x160xf32> -> vector<256x160xf32>
    %c0_12 = arith.constant 0 : index
    %c0_13 = arith.constant 0 : index
    %28 = vector.load %arg6[%c0_12, %c0_13] : memref<1x160xf32, #tpu.memory_space<vmem>>, vector<1x160xf32>
    %29 = vector.broadcast %28 : vector<1x160xf32> to vector<256x160xf32>
    %30 = arith.addf %27, %29 : vector<256x160xf32>
    %c0_14 = arith.constant 0 : index
    %c0_15 = arith.constant 0 : index
    %31 = vector.load %arg2[%c0_14, %c0_15] : memref<256x1xf32, #tpu.memory_space<vmem>>, vector<256x1xf32>
    %32 = vector.extract_strided_slice %30 {offsets = [0, 0], sizes = [256, 64], strides = [1, 1]} : vector<256x160xf32> to vector<256x64xf32>
    %33 = vector.broadcast %31 : vector<256x1xf32> to vector<256x64xf32>
    %34 = arith.mulf %33, %32 : vector<256x64xf32>
    %35 = vector.extract_strided_slice %30 {offsets = [0, 64], sizes = [256, 64], strides = [1, 1]} : vector<256x160xf32> to vector<256x64xf32>
    %36 = arith.negf %35 : vector<256x64xf32>
    %37 = math.exp %36 : vector<256x64xf32>
    %cst_16 = arith.constant 1.000000e+00 : f32
    %38 = vector.broadcast %cst_16 : f32 to vector<256x64xf32>
    %39 = arith.addf %38, %37 : vector<256x64xf32>
    %40 = arith.divf %38, %39 : vector<256x64xf32>
    %41 = arith.mulf %34, %40 : vector<256x64xf32>
    %42 = tpu.transpose %41, [1, 0] : vector<256x64xf32> -> vector<64x256xf32>
    %43 = arith.truncf %42 : vector<64x256xf32> to vector<64x256xbf16>
    %c0_17 = arith.constant 0 : index
    %c0_18 = arith.constant 0 : index
    %44 = vector.load %arg7[%c0_17, %c0_18] : memref<64x256xbf16, #tpu.memory_space<vmem>>, vector<64x256xbf16>
    tpu.vector_store %arg7[%c0_17, %c0_18], %43 {strides = array<i32>} : memref<64x256xbf16, #tpu.memory_space<vmem>>, vector<64x256xbf16>,
    %45 = vector.extract_strided_slice %30 {offsets = [0, 128], sizes = [256, 32], strides = [1, 1]} : vector<256x160xf32> to vector<256x32xf32>
    %46 = arith.negf %45 : vector<256x32xf32>
    %47 = math.exp %46 : vector<256x32xf32>
    %cst_19 = arith.constant 1.000000e+00 : f32
    %48 = vector.broadcast %cst_19 : f32 to vector<256x32xf32>
    %49 = arith.addf %48, %47 : vector<256x32xf32>
    %50 = arith.divf %48, %49 : vector<256x32xf32>
    %51 = arith.truncf %50 : vector<256x32xf32> to vector<256x32xbf16>
    %c0_20 = arith.constant 0 : index
    %c0_21 = arith.constant 0 : index
    %52 = vector.load %arg8[%c0_20, %c0_21] : memref<256x32xbf16, #tpu.memory_space<vmem>>, vector<256x32xbf16>
    tpu.vector_store %arg8[%c0_20, %c0_21], %51 {strides = array<i32>} : memref<256x32xbf16, #tpu.memory_space<vmem>>, vector<256x32xbf16>,
    return
  }
  func.func @transform_0(%arg0: i32) -> (i32, i32) {
    %c0_i32 = arith.constant 0 : i32
    %c0_i32_0 = arith.constant 0 : i32
    return %arg0, %c0_i32 : i32, i32
  }
  func.func @transform_1(%arg0: i32) -> (i32, i32) {
    %c0_i32 = arith.constant 0 : i32
    %c0_i32_0 = arith.constant 0 : i32
    return %arg0, %c0_i32 : i32, i32
  }
  func.func @transform_2(%arg0: i32) -> (i32, i32) {
    %c0_i32 = arith.constant 0 : i32
    %c0_i32_0 = arith.constant 0 : i32
    %c0_i32_1 = arith.constant 0 : i32
    return %c0_i32, %c0_i32_0 : i32, i32
  }
  func.func @transform_3(%arg0: i32) -> (i32, i32) {
    %c0_i32 = arith.constant 0 : i32
    %c0_i32_0 = arith.constant 0 : i32
    %c0_i32_1 = arith.constant 0 : i32
    return %c0_i32, %c0_i32_0 : i32, i32
  }
  func.func @transform_4(%arg0: i32) -> (i32, i32) {
    %c0_i32 = arith.constant 0 : i32
    %c0_i32_0 = arith.constant 0 : i32
    %c0_i32_1 = arith.constant 0 : i32
    return %c0_i32, %c0_i32_0 : i32, i32
  }
  func.func @transform_5(%arg0: i32) -> (i32, i32) {
    %c0_i32 = arith.constant 0 : i32
    %c0_i32_0 = arith.constant 0 : i32
    %c0_i32_1 = arith.constant 0 : i32
    return %c0_i32, %c0_i32_0 : i32, i32
  }
  func.func @transform_6(%arg0: i32) -> (i32, i32) {
    %c0_i32 = arith.constant 0 : i32
    %c0_i32_0 = arith.constant 0 : i32
    return %c0_i32, %arg0 : i32, i32
  }
  func.func @transform_7(%arg0: i32) -> (i32, i32) {
    %c0_i32 = arith.constant 0 : i32
    %c0_i32_0 = arith.constant 0 : i32
    return %arg0, %c0_i32 : i32, i32
  }
}

</mosaic_0001>

<bundles_post_ra>
// kernel: tpu_custom_call.1
= control target key start
LH: loop header
LB: loop body
LE: loop exit
PB: predicated region body
PF: predicated region fallthrough
CT: control target
= control target key end

     0   :  { %13 = vsyncpa [#allocation3], 0  ;;  %s3840_s0 = inlined_call_operand.hbm [shape: f32[256,32], index: 0, kind: input, shape index: {}]   ;;  %s3841_s1 = inlined_call_operand.hbm [shape: f32[256,1], index: 1, kind: input, shape index: {}]   ;;  %s3842_s2 = inlined_call_operand.hbm [shape: f32[1,32], index: 2, kind: input, shape index: {}]   ;;  %s3843_s3 = inlined_call_operand.hbm [shape: f32[1,32], index: 3, kind: input, shape index: {}]   ;;  %s3844_s4 = inlined_call_operand.hbm [shape: bf16[32,160], index: 4, kind: input, shape index: {}]   ;;  %s3845_s5 = inlined_call_operand.hbm [shape: f32[1,160], index: 5, kind: input, shape index: {}]   ;;  %s3846_s6 = inlined_call_operand.hbm [shape: bf16[64,256], index: 6, kind: output, shape index: {0}]   ;;  %s3847_s7 = inlined_call_operand.hbm [shape: bf16[256,32], index: 7, kind: output, shape index: {1}]  }
   0x1   :  { %14 = vsyncpa [#allocation6], 0 }
   0x2   :  { %15 = vsyncpa [#allocation9], 0 }
   0x3   :  { %16 = vsyncpa [#allocation12], 0 }
   0x4   :  { %17 = vsyncpa [#allocation4], 0 }
   0x5   :  { %18 = vsyncpa [#allocation15], 0  ;;  %s2781_s24 = smov [#allocation5]   ;;  %s2782_s26 = smov [#allocation8]  }
   0x6   :  { %s36_s25 = sshll.u32 %s2781_s24, 4  ;;  %s59_s27 = sshll.u32 %s2782_s26, 4  ;;  %s37_s25 = int_to_ptr.vmem [resolvable:$true] %s36_s25  ;;  %s2834_s27 = int_to_ptr.vmem [resolvable:$true] %s59_s27 }
   0x7   :  { %s2593_s30 = scalar_lea.hbm %s3841_s1, 4096 }
   0x8   :  { %p2594_p0 = scmp.ne.s32.totalorder %s3841_s1, %s2593_s30  ;;  %p2597_p1 = scmp.lt.u32.totalorder %s2593_s30, %s3841_s1 }
   0xa   :  { %p2599_p2 = pnand %p2597_p1, %p2594_p0 }
   0xc   :  { %2602 = shalt.err (!%p2599_p2)
}
   0xd   :  { %s2603_s12 = scalar_lea.vmem %s37_s25, 4096  ;;  %p2608_p4 = scmp.lt.s32.totalorder %s37_s25, %s37_s25 }
   0xe   :  { %p2604_p3 = scmp.ne.s32.totalorder %s37_s25, %s2603_s12  ;;  %p2609_p5 = scmp.lt.s32.totalorder %s2603_s12, %s2603_s12 }
  0x10   :  { %p2610_p6 = por %p2609_p5, %p2608_p4 }
  0x12   :  { %p2611_p7 = pnand %p2610_p6, %p2604_p3 }
  0x14   :  { %2614 = shalt.err (!%p2611_p7)
}
  0x15   :  { %s2783_s13 = smov 128   ;;  %s2784_s14 = smov 8  }
  0x16   :  { %42 = dma.hbm_to_vmem [thread:$0]  %s3841_s1, 4096, %s37_s25, [#allocation6], %s2783_s13, %s2783_s13, %s2784_s14  }
  0x17   :  { %s2615_s19 = scalar_lea.hbm %s3843_s3, 16 }
  0x18   :  { %p2616_p8 = scmp.ne.s32.totalorder %s3843_s3, %s2615_s19  ;;  %p2619_p9 = scmp.lt.u32.totalorder %s2615_s19, %s3843_s3 }
  0x1a   :  { %p2621_p10 = pnand %p2619_p9, %p2616_p8 }
  0x1c   :  { %2624 = shalt.err (!%p2621_p10)
}
  0x1d   :  { %s2625_s24 = scalar_lea.vmem %s2834_s27, 16  ;;  %s2629_s1 = scalar_lea.vmem %s2834_s27, 32 }
  0x1e   :  { %p2626_p11 = scmp.ne.s32.totalorder %s2834_s27, %s2625_s24  ;;  %p2630_p12 = scmp.lt.s32.totalorder %s2834_s27, %s2834_s27 }
  0x1f   :  { %p2631_p13 = scmp.lt.s32.totalorder %s2629_s1, %s2625_s24 }
  0x21   :  { %p2632_p0 = por %p2631_p13, %p2630_p12 }
  0x23   :  { %p2633_p1 = pnand %p2632_p0, %p2626_p11 }
  0x25   :  { %2636 = shalt.err (!%p2633_p1)
}
  0x26   :  { %62 = dma.hbm_to_vmem [thread:$0]  %s3843_s3, 16, %s2834_s27, [#allocation9]  }
  0x27   :  { %s2785_s28 = smov [#allocation2]   ;;  %s2786_s30 = smov [#allocation7]  }
  0x28   :  { %s24_s29 = sshll.u32 %s2785_s28, 4  ;;  %s49_s8 = sshll.u32 %s2786_s30, 4  ;;  %s25_s29 = int_to_ptr.vmem [resolvable:$true] %s24_s29  ;;  %s50_s8 = int_to_ptr.vmem [resolvable:$true] %s49_s8 }
  0x29   :  { %s2637_s11 = scalar_lea.hbm %s3840_s0, 4096 }
  0x2a   :  { %p2638_p2 = scmp.ne.s32.totalorder %s3840_s0, %s2637_s11  ;;  %p2641_p3 = scmp.lt.u32.totalorder %s2637_s11, %s3840_s0 }
  0x2c   :  { %p2643_p4 = pnand %p2641_p3, %p2638_p2 }
  0x2e   :  { %2646 = shalt.err (!%p2643_p4)
}
  0x2f   :  { %s2647_s3 = scalar_lea.vmem %s25_s29, 4096  ;;  %p2652_p6 = scmp.lt.s32.totalorder %s25_s29, %s25_s29 }
  0x30   :  { %p2648_p5 = scmp.ne.s32.totalorder %s25_s29, %s2647_s3  ;;  %p2653_p7 = scmp.lt.s32.totalorder %s2647_s3, %s2647_s3 }
  0x32   :  { %p2654_p8 = por %p2653_p7, %p2652_p6 }
  0x34   :  { %p2655_p9 = pnand %p2654_p8, %p2648_p5 }
  0x36   :  { %2658 = shalt.err (!%p2655_p9)
}
  0x37   :  { %30 = dma.hbm_to_vmem [thread:$0]  %s3840_s0, 4096, %s25_s29, [#allocation3], %s2783_s13, %s2783_s13, %s2784_s14  }
  0x38   :  { %s2659_s21 = scalar_lea.hbm %s3842_s2, 16 }
  0x39   :  { %p2660_p10 = scmp.ne.s32.totalorder %s3842_s2, %s2659_s21  ;;  %p2663_p11 = scmp.lt.u32.totalorder %s2659_s21, %s3842_s2 }
  0x3b   :  { %p2665_p12 = pnand %p2663_p11, %p2660_p10 }
  0x3d   :  { %2668 = shalt.err (!%p2665_p12)
}
  0x3e   :  { %s2669_s25 = scalar_lea.vmem %s50_s8, 16  ;;  %s2673_s26 = scalar_lea.vmem %s50_s8, 32 }
  0x3f   :  { %p2670_p13 = scmp.ne.s32.totalorder %s50_s8, %s2669_s25  ;;  %p2674_p0 = scmp.lt.s32.totalorder %s50_s8, %s50_s8 }
  0x40   :  { %p2675_p1 = scmp.lt.s32.totalorder %s2673_s26, %s2669_s25 }
  0x42   :  { %p2676_p2 = por %p2675_p1, %p2674_p0 }
  0x44   :  { %p2677_p3 = pnand %p2676_p2, %p2670_p13 }
  0x46   :  { %2680 = shalt.err (!%p2677_p3)
}
  0x47   :  { %52 = dma.hbm_to_vmem [thread:$0]  %s3842_s2, 16, %s50_s8, [#allocation6]  }
  0x48   :  { %s2787_s29 = smov [#allocation10]   ;;  %s2788_s9 = smov [#allocation11]  }
  0x49   :  { %s68_s30 = sshll.u32 %s2787_s29, 4  ;;  %s81_s10 = sshll.u32 %s2788_s9, 4  ;;  %s69_s30 = int_to_ptr.vmem [resolvable:$true] %s68_s30  ;;  %s82_s10 = int_to_ptr.vmem [resolvable:$true] %s81_s10 }
  0x4a   :  { %s2681_s15 = scalar_lea.hbm %s3844_s4, 512 }
  0x4b   :  { %p2682_p4 = scmp.ne.s32.totalorder %s3844_s4, %s2681_s15  ;;  %p2685_p5 = scmp.lt.u32.totalorder %s2681_s15, %s3844_s4 }
  0x4d   :  { %p2687_p6 = pnand %p2685_p5, %p2682_p4 }
  0x4f   :  { %2690 = shalt.err (!%p2687_p6)
}
  0x50   :  { %s2691_s2 = scalar_lea.vmem %s69_s30, 512  ;;  %p2696_p8 = scmp.lt.s32.totalorder %s69_s30, %s69_s30 }
  0x51   :  { %p2692_p7 = scmp.ne.s32.totalorder %s69_s30, %s2691_s2  ;;  %p2697_p9 = scmp.lt.s32.totalorder %s2691_s2, %s2691_s2 }
  0x53   :  { %p2698_p10 = por %p2697_p9, %p2696_p8 }
  0x55   :  { %p2699_p11 = pnand %p2698_p10, %p2692_p7 }
  0x57   :  { %2702 = shalt.err (!%p2699_p11)
}
  0x58   :  { %74 = dma.hbm_to_vmem [thread:$0]  %s3844_s4, 512, %s69_s30, [#allocation9], %s2783_s13, %s2783_s13, %s2784_s14  }
  0x59   :  { %s2703_s21 = scalar_lea.hbm %s3845_s5, 32 }
  0x5a   :  { %p2704_p12 = scmp.ne.s32.totalorder %s3845_s5, %s2703_s21  ;;  %p2707_p13 = scmp.lt.u32.totalorder %s2703_s21, %s3845_s5 }
  0x5c   :  { %p2709_p0 = pnand %p2707_p13, %p2704_p12 }
  0x5e   :  { %2712 = shalt.err (!%p2709_p0)
}
  0x5f   :  { %s2713_s25 = scalar_lea.vmem %s82_s10, 32  ;;  %p2718_p2 = scmp.lt.s32.totalorder %s82_s10, %s82_s10 }
  0x60   :  { %p2714_p1 = scmp.ne.s32.totalorder %s82_s10, %s2713_s25  ;;  %p2719_p3 = scmp.lt.s32.totalorder %s2713_s25, %s2713_s25 }
  0x62   :  { %p2720_p4 = por %p2719_p3, %p2718_p2 }
  0x64   :  { %p2721_p5 = pnand %p2720_p4, %p2714_p1 }
  0x66   :  { %2724 = shalt.err (!%p2721_p5)
}
  0x67   :  { %84 = dma.hbm_to_vmem [thread:$0]  %s3845_s5, 32, %s82_s10, [#allocation12]  }
  0x68   :  { %2769 = dma.done.wait [#allocation3], 4096  }
  0x69   :  { %2770 = vsyncadd [#allocation3], 4294963200 }
  0x6a   :  { %2771 = dma.done.wait [#allocation6], 4112  }
  0x6b   :  { %2772 = vsyncadd [#allocation6], 4294963184 }
  0x6c   :  { %2773 = dma.done.wait [#allocation9], 528  }
  0x6d   :  { %2774 = vsyncadd [#allocation9], 4294966768 }
  0x6e   :  { %2775 = dma.done.wait [#allocation12], 32  }
  0x6f   :  { %2776 = vsyncadd [#allocation12], 4294967264  ;;  %vm138_vm0 = vcmask 261120   ;;  %v2923_v0 = vld [vmem:[#allocation2] sm:$0xff]  ;;  %v2927_v2 = vld [vmem:[#allocation2 + $0x8] sm:$0xff]  ;;  %vm1941_vm1 = vcmask 257024  }
  0x70   :  { %v2925_v1 = vld [vmem:[#allocation2 + $0x80] sm:$0xff]  ;;  %v139_v3 = vsel %vm138_vm0, %v2923_v0, 0.0  ;;  %v2933_v5 = vld [vmem:[#allocation2 + $0x88] sm:$0xff]  ;;  %v142_v6 = vsel %vm138_vm0, %v2927_v2, 0.0  ;;  %v2939_v8 = vld [vmem:[#allocation2 + $0x10] sm:$0xff]  ;;  %s2790_s5 = smov 64  }
  0x71   :  { %v187_v4 = vsel %vm138_vm0, %v2925_v1, 0.0  ;;  %140 = vadd.xlane.f32.xlu0 %v139_v3  ;;  %v190_v7 = vsel %vm138_vm0, %v2933_v5, 0.0  ;;  %v2941_v9 = vld [vmem:[#allocation2 + $0x18] sm:$0xff]  ;;  %v145_v10 = vsel %vm138_vm0, %v2939_v8, 0.0  ;;  %v2947_v12 = vld [vmem:[#allocation2 + $0x90] sm:$0xff]  ;;  %v2955_v16 = vld [vmem:[#allocation2 + $0x20] sm:$0xff] }
  0x72   :  { %188 = vadd.xlane.f32.xlu1 %v187_v4  ;;  %v148_v11 = vsel %vm138_vm0, %v2941_v9, 0.0  ;;  %v2949_v13 = vld [vmem:[#allocation2 + $0x98] sm:$0xff]  ;;  %v193_v14 = vsel %vm138_vm0, %v2947_v12, 0.0  ;;  %v2957_v17 = vld [vmem:[#allocation2 + $0x28] sm:$0xff]  ;;  %v151_v18 = vsel %vm138_vm0, %v2955_v16, 0.0  ;;  %v2963_v20 = vld [vmem:[#allocation2 + $0xa0] sm:$0xff] }
  0x73   :  { %v196_v15 = vsel %vm138_vm0, %v2949_v13, 0.0  ;;  %v154_v19 = vsel %vm138_vm0, %v2957_v17, 0.0  ;;  %v2965_v21 = vld [vmem:[#allocation2 + $0xa8] sm:$0xff]  ;;  %v199_v22 = vsel %vm138_vm0, %v2963_v20, 0.0  ;;  %v2971_v24 = vld [vmem:[#allocation2 + $0x30] sm:$0xff]  ;;  %v2973_v25 = vld [vmem:[#allocation2 + $0x38] sm:$0xff] }
  0x74   :  { %v202_v23 = vsel %vm138_vm0, %v2965_v21, 0.0  ;;  %v157_v26 = vsel %vm138_vm0, %v2971_v24, 0.0  ;;  %v160_v27 = vsel %vm138_vm0, %v2973_v25, 0.0  ;;  %v2979_v28 = vld [vmem:[#allocation2 + $0xb0] sm:$0xff]  ;;  %v2981_v29 = vld [vmem:[#allocation2 + $0xb8] sm:$0xff]  ;;  %v2987_v32 = vld [vmem:[#allocation2 + $0x40] sm:$0xff] }
  0x75   :  { %143 = vadd.xlane.f32.xlu0 %v142_v6  ;;  %v205_v30 = vsel %vm138_vm0, %v2979_v28, 0.0  ;;  %v208_v31 = vsel %vm138_vm0, %v2981_v29, 0.0  ;;  %v2989_v33 = vld [vmem:[#allocation2 + $0x48] sm:$0xff]  ;;  %v163_v34 = vsel %vm138_vm0, %v2987_v32, 0.0  ;;  %v2995_v36 = vld [vmem:[#allocation2 + $0xc0] sm:$0xff]  ;;  %v3003_v40 = vld [vmem:[#allocation2 + $0x50] sm:$0xff] }
  0x76   :  { %191 = vadd.xlane.f32.xlu1 %v190_v7  ;;  %v166_v35 = vsel %vm138_vm0, %v2989_v33, 0.0  ;;  %v2997_v37 = vld [vmem:[#allocation2 + $0xc8] sm:$0xff]  ;;  %v211_v38 = vsel %vm138_vm0, %v2995_v36, 0.0  ;;  %v3005_v41 = vld [vmem:[#allocation2 + $0x58] sm:$0xff]  ;;  %v169_v42 = vsel %vm138_vm0, %v3003_v40, 0.0  ;;  %v3011_v44 = vld [vmem:[#allocation2 + $0xd0] sm:$0xff] }
  0x77   :  { %v214_v39 = vsel %vm138_vm0, %v2997_v37, 0.0  ;;  %v172_v43 = vsel %vm138_vm0, %v3005_v41, 0.0  ;;  %v3013_v45 = vld [vmem:[#allocation2 + $0xd8] sm:$0xff]  ;;  %v217_v46 = vsel %vm138_vm0, %v3011_v44, 0.0  ;;  %v3019_v48 = vld [vmem:[#allocation2 + $0x60] sm:$0xff]  ;;  %v3021_v49 = vld [vmem:[#allocation2 + $0x68] sm:$0xff] }
  0x78   :  { %v220_v47 = vsel %vm138_vm0, %v3013_v45, 0.0  ;;  %v175_v50 = vsel %vm138_vm0, %v3019_v48, 0.0  ;;  %v178_v51 = vsel %vm138_vm0, %v3021_v49, 0.0  ;;  %v3027_v52 = vld [vmem:[#allocation2 + $0xe0] sm:$0xff]  ;;  %v3029_v53 = vld [vmem:[#allocation2 + $0xe8] sm:$0xff]  ;;  %v3035_v56 = vld [vmem:[#allocation2 + $0x70] sm:$0xff] }
  0x79   :  { %146 = vadd.xlane.f32.xlu0 %v145_v10  ;;  %v223_v54 = vsel %vm138_vm0, %v3027_v52, 0.0  ;;  %v226_v55 = vsel %vm138_vm0, %v3029_v53, 0.0  ;;  %v3037_v57 = vld [vmem:[#allocation2 + $0x78] sm:$0xff]  ;;  %v181_v58 = vsel %vm138_vm0, %v3035_v56, 0.0  ;;  %v3043_v60 = vld [vmem:[#allocation2 + $0xf0] sm:$0xff]  ;;  %s2791_s0 = smov [#allocation14]  }
  0x7a   :  { %149 = vadd.xlane.f32.xlu1 %v148_v11  ;;  %v184_v59 = vsel %vm138_vm0, %v3037_v57, 0.0  ;;  %v3045_v61 = vld [vmem:[#allocation2 + $0xf8] sm:$0xff]  ;;  %v229_v62 = vsel %vm138_vm0, %v3043_v60, 0.0  ;;  %s1991_s28 = sshll.u32 %s2791_s0, 4  ;;  %s1992_s28 = int_to_ptr.vmem [resolvable:$true] %s1991_s28 }
  0x7b   :  { %v232_v63 = vsel %vm138_vm0, %v3045_v61, 0.0  ;;  %s2725_s29 = scalar_lea.vmem %s1992_s28, 2048  ;;  %p2730_p7 = scmp.lt.s32.totalorder %s1992_s28, %s1992_s28 }
  0x7c   :  { %p2726_p6 = scmp.ne.s32.totalorder %s1992_s28, %s2725_s29  ;;  %p2731_p8 = scmp.lt.s32.totalorder %s2725_s29, %s2725_s29 }
  0x7d   :  { %194 = vadd.xlane.f32.xlu0 %v193_v14 }
  0x7e   :  { %197 = vadd.xlane.f32.xlu1 %v196_v15  ;;  %p2732_p9 = por %p2731_p8, %p2730_p7 }
  0x80   :  { %p2733_p10 = pnand %p2732_p9, %p2726_p6 }
  0x81   :  { %152 = vadd.xlane.f32.xlu0 %v151_v18 }
  0x82   :  { %155 = vadd.xlane.f32.xlu1 %v154_v19 }
  0x85   :  { %200 = vadd.xlane.f32.xlu0 %v199_v22 }
  0x86   :  { %203 = vadd.xlane.f32.xlu1 %v202_v23 }
  0x89   :  { %158 = vadd.xlane.f32.xlu0 %v157_v26 }
  0x8a   :  { %161 = vadd.xlane.f32.xlu1 %v160_v27 }
  0x8d   :  { %206 = vadd.xlane.f32.xlu0 %v205_v30 }
  0x8e   :  { %209 = vadd.xlane.f32.xlu1 %v208_v31 }
  0x91   :  { %164 = vadd.xlane.f32.xlu0 %v163_v34 }
  0x92   :  { %167 = vadd.xlane.f32.xlu1 %v166_v35 }
  0x95   :  { %212 = vadd.xlane.f32.xlu0 %v211_v38 }
  0x96   :  { %215 = vadd.xlane.f32.xlu1 %v214_v39 }
  0x99   :  { %170 = vadd.xlane.f32.xlu0 %v169_v42 }
  0x9a   :  { %173 = vadd.xlane.f32.xlu1 %v172_v43 }
  0x9d   :  { %218 = vadd.xlane.f32.xlu0 %v217_v46 }
  0x9e   :  { %221 = vadd.xlane.f32.xlu1 %v220_v47 }
  0xa1   :  { %176 = vadd.xlane.f32.xlu0 %v175_v50 }
  0xa2   :  { %179 = vadd.xlane.f32.xlu1 %v178_v51 }
  0xa5   :  { %224 = vadd.xlane.f32.xlu0 %v223_v54 }
  0xa6   :  { %227 = vadd.xlane.f32.xlu1 %v226_v55 }
  0xa9   :  { %182 = vadd.xlane.f32.xlu0 %v181_v58 }
  0xaa   :  { %185 = vadd.xlane.f32.xlu1 %v184_v59 }
  0xad   :  { %230 = vadd.xlane.f32.xlu0 %v229_v62 }
  0xae   :  { %233 = vadd.xlane.f32.xlu1 %v232_v63 }
  0xfe   :  { %v141_v3 = vpop.xlane.xlu0 %140 }
  0xff   :  { %v189_v4 = vpop.xlane.xlu1 %188  ;;  %v236_v6 = vmul.f32 0.03125, %v141_v3 }
 0x100   :  { %v252_v7 = vmul.f32 0.03125, %v189_v4 }
 0x101   :  { %v3052_v10 = vsub.f32 %v2923_v0, %v236_v6 }
 0x102   :  { %v3055_v11 = vsub.f32 %v2925_v1, %v252_v7  ;;  %v144_v14 = vpop.xlane.xlu0 %143 }
 0x103   :  { %v192_v15 = vpop.xlane.xlu1 %191  ;;  %v237_v18 = vmul.f32 0.03125, %v144_v14  ;;  %v300_v22 = vmul.f32 %v3052_v10, %v3052_v10 }
 0x104   :  { %v253_v19 = vmul.f32 0.03125, %v192_v15  ;;  %v316_v23 = vmul.f32 %v3055_v11, %v3055_v11 }
 0x105   :  { %v3062_v26 = vsub.f32 %v2927_v2, %v237_v18  ;;  %v332_v0 = vsel %vm138_vm0, %v300_v22, 0.0 }
 0x106   :  { %v3065_v27 = vsub.f32 %v2933_v5, %v253_v19  ;;  %333 = vadd.xlane.f32.xlu0 %v332_v0  ;;  %v147_v1 = vpop.xlane.xlu0 %146  ;;  %v380_v31 = vsel %vm138_vm0, %v316_v23, 0.0 }
 0x107   :  { %v150_v30 = vpop.xlane.xlu1 %149  ;;  %v238_v34 = vmul.f32 0.03125, %v147_v1  ;;  %v301_v38 = vmul.f32 %v3062_v26, %v3062_v26 }
 0x108   :  { %v239_v35 = vmul.f32 0.03125, %v150_v30  ;;  %v317_v39 = vmul.f32 %v3065_v27, %v3065_v27 }
 0x109   :  { %v3074_v2 = vsub.f32 %v2939_v8, %v238_v34  ;;  %v335_v42 = vsel %vm138_vm0, %v301_v38, 0.0 }
 0x10a   :  { %v3077_v5 = vsub.f32 %v2941_v9, %v239_v35  ;;  %381 = vadd.xlane.f32.xlu0 %v380_v31  ;;  %336 = vadd.xlane.f32.xlu1 %v335_v42  ;;  %v195_v43 = vpop.xlane.xlu0 %194  ;;  %v383_v47 = vsel %vm138_vm0, %v317_v39, 0.0 }
 0x10b   :  { %v198_v46 = vpop.xlane.xlu1 %197  ;;  %v254_v50 = vmul.f32 0.03125, %v195_v43  ;;  %v302_v54 = vmul.f32 %v3074_v2, %v3074_v2 }
 0x10c   :  { %v255_v51 = vmul.f32 0.03125, %v198_v46  ;;  %v303_v8 = vmul.f32 %v3077_v5, %v3077_v5 }
 0x10d   :  { %v3086_v55 = vsub.f32 %v2947_v12, %v254_v50  ;;  %v338_v58 = vsel %vm138_vm0, %v302_v54, 0.0 }
 0x10e   :  { %v3089_v9 = vsub.f32 %v2949_v13, %v255_v51  ;;  %384 = vadd.xlane.f32.xlu1 %v383_v47  ;;  %339 = vadd.xlane.f32.xlu0 %v338_v58  ;;  %v153_v59 = vpop.xlane.xlu0 %152  ;;  %v341_v63 = vsel %vm138_vm0, %v303_v8, 0.0 }
 0x10f   :  { %v156_v62 = vpop.xlane.xlu1 %155  ;;  %v240_v3 = vmul.f32 0.03125, %v153_v59  ;;  %v318_v6 = vmul.f32 %v3086_v55, %v3086_v55 }
 0x110   :  { %v241_v4 = vmul.f32 0.03125, %v156_v62  ;;  %v319_v12 = vmul.f32 %v3089_v9, %v3089_v9 }
 0x111   :  { %v3098_v7 = vsub.f32 %v2955_v16, %v240_v3  ;;  %v386_v14 = vsel %vm138_vm0, %v318_v6, 0.0 }
 0x112   :  { %v3101_v13 = vsub.f32 %v2957_v17, %v241_v4  ;;  %342 = vadd.xlane.f32.xlu1 %v341_v63  ;;  %387 = vadd.xlane.f32.xlu0 %v386_v14  ;;  %v201_v15 = vpop.xlane.xlu0 %200  ;;  %v389_v19 = vsel %vm138_vm0, %v319_v12, 0.0 }
 0x113   :  { %v204_v18 = vpop.xlane.xlu1 %203  ;;  %v256_v22 = vmul.f32 0.03125, %v201_v15  ;;  %v304_v0 = vmul.f32 %v3098_v7, %v3098_v7 }
 0x114   :  { %v257_v23 = vmul.f32 0.03125, %v204_v18  ;;  %v305_v16 = vmul.f32 %v3101_v13, %v3101_v13 }
 0x115   :  { %v3110_v1 = vsub.f32 %v2963_v20, %v256_v22  ;;  %v344_v30 = vsel %vm138_vm0, %v304_v0, 0.0 }
 0x116   :  { %v3113_v17 = vsub.f32 %v2965_v21, %v257_v23  ;;  %390 = vadd.xlane.f32.xlu1 %v389_v19  ;;  %345 = vadd.xlane.f32.xlu0 %v344_v30  ;;  %v159_v31 = vpop.xlane.xlu0 %158  ;;  %v347_v35 = vsel %vm138_vm0, %v305_v16, 0.0 }
 0x117   :  { %v162_v34 = vpop.xlane.xlu1 %161  ;;  %v242_v38 = vmul.f32 0.03125, %v159_v31  ;;  %v320_v42 = vmul.f32 %v3110_v1, %v3110_v1 }
 0x118   :  { %v243_v39 = vmul.f32 0.03125, %v162_v34  ;;  %v321_v20 = vmul.f32 %v3113_v17, %v3113_v17 }
 0x119   :  { %v3122_v43 = vsub.f32 %v2971_v24, %v242_v38  ;;  %v392_v46 = vsel %vm138_vm0, %v320_v42, 0.0  ;;  %v2267_v42 = vld [vmem:[#allocation10 + $0x4] ss:$8 sps:$4 sm:$0xff]  }
 0x11a   :  { %v3125_v21 = vsub.f32 %v2973_v25, %v243_v39  ;;  %348 = vadd.xlane.f32.xlu1 %v347_v35  ;;  %393 = vadd.xlane.f32.xlu0 %v392_v46  ;;  %v207_v47 = vpop.xlane.xlu0 %206  ;;  %v395_v51 = vsel %vm138_vm0, %v321_v20, 0.0 }
 0x11b   :  { %v210_v50 = vpop.xlane.xlu1 %209  ;;  %v258_v54 = vmul.f32 0.03125, %v207_v47  ;;  %v306_v58 = vmul.f32 %v3122_v43, %v3122_v43  ;;  %732 = vmatprep.subr.bf16.mxu0 %v2267_v42  ;;  %2176 = vmatprep.subr.bf16.mxu1 %v2267_v42 }
 0x11c   :  { %v259_v8 = vmul.f32 0.03125, %v210_v50  ;;  %v307_v24 = vmul.f32 %v3125_v21, %v3125_v21  ;;  %v2269_v50 = vld [vmem:[#allocation10] ss:$8 sps:$4 sm:$0xff]  }
 0x11d   :  { %v3134_v59 = vsub.f32 %v2979_v28, %v258_v54  ;;  %v350_v62 = vsel %vm138_vm0, %v306_v58, 0.0  ;;  %733 = vmatpush1.bf16.msra.mxu0 %v2269_v50  ;;  %2178 = vmatpush1.bf16.msra.mxu1 %v2269_v50 }
 0x11e   :  { %v3137_v25 = vsub.f32 %v2981_v29, %v259_v8  ;;  %396 = vadd.xlane.f32.xlu1 %v395_v51  ;;  %351 = vadd.xlane.f32.xlu0 %v350_v62  ;;  %v165_v63 = vpop.xlane.xlu0 %164  ;;  %v353_v4 = vsel %vm138_vm0, %v307_v24, 0.0  ;;  %v2270_v62 = vld [vmem:[#allocation10 + $0x14] ss:$8 sps:$4 sm:$0xff]  }
 0x11f   :  { %v168_v3 = vpop.xlane.xlu1 %167  ;;  %v244_v6 = vmul.f32 0.03125, %v165_v63  ;;  %v322_v14 = vmul.f32 %v3134_v59, %v3134_v59  ;;  %734 = vmatprep.subr.bf16.mxu0 %v2270_v62  ;;  %2177 = vmatprep.subr.bf16.mxu1 %v2270_v62 }
 0x120   :  { %v245_v12 = vmul.f32 0.03125, %v168_v3  ;;  %v323_v28 = vmul.f32 %v3137_v25, %v3137_v25 }
 0x121   :  { %v3146_v15 = vsub.f32 %v2987_v32, %v244_v6  ;;  %v398_v18 = vsel %vm138_vm0, %v322_v14, 0.0 }
 0x122   :  { %v3149_v29 = vsub.f32 %v2989_v33, %v245_v12  ;;  %354 = vadd.xlane.f32.xlu1 %v353_v4  ;;  %399 = vadd.xlane.f32.xlu0 %v398_v18  ;;  %v213_v19 = vpop.xlane.xlu0 %212  ;;  %v401_v23 = vsel %vm138_vm0, %v323_v28, 0.0  ;;  %v2272_v4 = vld [vmem:[#allocation10 + $0x10] ss:$8 sps:$4 sm:$0xff]  }
 0x123   :  { %v216_v22 = vpop.xlane.xlu1 %215  ;;  %v260_v0 = vmul.f32 0.03125, %v213_v19  ;;  %v308_v30 = vmul.f32 %v3146_v15, %v3146_v15  ;;  %735 = vmatpush1.bf16.msra.mxu0 %v2272_v4  ;;  %2179 = vmatpush1.bf16.msra.mxu1 %v2272_v4 }
 0x124   :  { %v261_v16 = vmul.f32 0.03125, %v216_v22  ;;  %v309_v32 = vmul.f32 %v3149_v29, %v3149_v29 }
 0x125   :  { %v3158_v31 = vsub.f32 %v2995_v36, %v260_v0  ;;  %v356_v34 = vsel %vm138_vm0, %v308_v30, 0.0 }
 0x126   :  { %v3161_v33 = vsub.f32 %v2997_v37, %v261_v16  ;;  %402 = vadd.xlane.f32.xlu1 %v401_v23  ;;  %357 = vadd.xlane.f32.xlu0 %v356_v34  ;;  %v171_v35 = vpop.xlane.xlu0 %170  ;;  %v359_v39 = vsel %vm138_vm0, %v309_v32, 0.0 }
 0x127   :  { %v174_v38 = vpop.xlane.xlu1 %173  ;;  %v246_v20 = vmul.f32 0.03125, %v171_v35  ;;  %v324_v47 = vmul.f32 %v3158_v31, %v3158_v31 }
 0x128   :  { %v247_v46 = vmul.f32 0.03125, %v174_v38  ;;  %v325_v36 = vmul.f32 %v3161_v33, %v3161_v33 }
 0x129   :  { %v3170_v37 = vsub.f32 %v3003_v40, %v246_v20  ;;  %v404_v54 = vsel %vm138_vm0, %v324_v47, 0.0 }
 0x12a   :  { %v3173_v51 = vsub.f32 %v3005_v41, %v247_v46  ;;  %360 = vadd.xlane.f32.xlu1 %v359_v39  ;;  %405 = vadd.xlane.f32.xlu0 %v404_v54  ;;  %v219_v8 = vpop.xlane.xlu0 %218  ;;  %v407_v24 = vsel %vm138_vm0, %v325_v36, 0.0 }
 0x12b   :  { %v222_v58 = vpop.xlane.xlu1 %221  ;;  %v262_v63 = vmul.f32 0.03125, %v219_v8  ;;  %v310_v40 = vmul.f32 %v3170_v37, %v3170_v37 }
 0x12c   :  { %v263_v3 = vmul.f32 0.03125, %v222_v58  ;;  %v311_v41 = vmul.f32 %v3173_v51, %v3173_v51 }
 0x12d   :  { %v3182_v6 = vsub.f32 %v3011_v44, %v262_v63  ;;  %v362_v14 = vsel %vm138_vm0, %v310_v40, 0.0 }
 0x12e   :  { %v3185_v12 = vsub.f32 %v3013_v45, %v263_v3  ;;  %408 = vadd.xlane.f32.xlu1 %v407_v24  ;;  %363 = vadd.xlane.f32.xlu0 %v362_v14  ;;  %v177_v28 = vpop.xlane.xlu0 %176  ;;  %v365_v19 = vsel %vm138_vm0, %v311_v41, 0.0  ;;  %v2789_v45 = vmov 0  }
 0x12f   :  { %v180_v18 = vpop.xlane.xlu1 %179  ;;  %v248_v22 = vmul.f32 0.03125, %v177_v28  ;;  %v326_v0 = vmul.f32 %v3182_v6, %v3182_v6  ;;  %764 = vmatprep.mubr.bf16.mxu0 %v2789_v45  ;;  %844 = vmatprep.mubr.bf16.mxu1 %v2789_v45 }
 0x130   :  { %v249_v23 = vmul.f32 0.03125, %v180_v18  ;;  %v327_v44 = vmul.f32 %v3185_v12, %v3185_v12  ;;  %2194 = vset.pattern.permute.xlu1 %v2789_v45  ;;  %2193 = vset.pattern.permute.xlu0 %v2789_v45 }
 0x131   :  { %v3198_v16 = vsub.f32 %v3019_v48, %v248_v22  ;;  %v410_v32 = vsel %vm138_vm0, %v326_v0, 0.0 }
 0x132   :  { %v3201_v30 = vsub.f32 %v3021_v49, %v249_v23  ;;  %366 = vadd.xlane.f32.xlu1 %v365_v19  ;;  %411 = vadd.xlane.f32.xlu0 %v410_v32  ;;  %v225_v34 = vpop.xlane.xlu0 %224  ;;  %v413_v38 = vsel %vm138_vm0, %v327_v44, 0.0  ;;  %v927_v32 = vld [vmem:[#allocation5 + $0x10] sm:$0xff] }
 0x133   :  { %v228_v35 = vpop.xlane.xlu1 %227  ;;  %v264_v39 = vmul.f32 0.03125, %v225_v34  ;;  %v312_v20 = vmul.f32 %v3198_v16, %v3198_v16  ;;  %v928_v34 = vld [vmem:[#allocation5 + $0x18] sm:$0xff] }
 0x134   :  { %v265_v42 = vmul.f32 0.03125, %v228_v35  ;;  %v313_v48 = vmul.f32 %v3201_v30, %v3201_v30  ;;  %v929_v35 = vld [vmem:[#allocation5 + $0x20] sm:$0xff] }
 0x135   :  { %v3210_v46 = vsub.f32 %v3027_v52, %v264_v39  ;;  %v368_v47 = vsel %vm138_vm0, %v312_v20, 0.0  ;;  %v925_v39 = vld [vmem:[#allocation5] sm:$0xff]  ;;  %v931_v20 = vld [vmem:[#allocation5 + $0x30] sm:$0xff] }
 0x136   :  { %v3213_v49 = vsub.f32 %v3029_v53, %v265_v42  ;;  %414 = vadd.xlane.f32.xlu1 %v413_v38  ;;  %369 = vadd.xlane.f32.xlu0 %v368_v47  ;;  %v183_v36 = vpop.xlane.xlu0 %182  ;;  %v371_v54 = vsel %vm138_vm0, %v313_v48, 0.0  ;;  %v930_v38 = vld [vmem:[#allocation5 + $0x28] sm:$0xff]  ;;  %v936_v48 = vld [vmem:[#allocation5 + $0x58] sm:$0xff] }
 0x137   :  { %v186_v50 = vpop.xlane.xlu1 %185  ;;  %v250_v8 = vmul.f32 0.03125, %v183_v36  ;;  %v328_v24 = vmul.f32 %v3210_v46, %v3210_v46  ;;  %v934_v42 = vld [vmem:[#allocation5 + $0x48] sm:$0xff]  ;;  %v932_v47 = vld [vmem:[#allocation5 + $0x38] sm:$0xff] }
 0x138   :  { %v251_v58 = vmul.f32 0.03125, %v186_v50  ;;  %v329_v52 = vmul.f32 %v3213_v49, %v3213_v49  ;;  %v938_v36 = vld [vmem:[#allocation5 + $0x68] sm:$0xff]  ;;  %v933_v50 = vld [vmem:[#allocation5 + $0x40] sm:$0xff] }
 0x139   :  { %v3222_v62 = vsub.f32 %v3035_v56, %v250_v8  ;;  %v416_v63 = vsel %vm138_vm0, %v328_v24, 0.0  ;;  %v935_v8 = vld [vmem:[#allocation5 + $0x50] sm:$0xff]  ;;  %v937_v24 = vld [vmem:[#allocation5 + $0x60] sm:$0xff] }
 0x13a   :  { %v3225_v53 = vsub.f32 %v3037_v57, %v251_v58  ;;  %372 = vadd.xlane.f32.xlu1 %v371_v54  ;;  %417 = vadd.xlane.f32.xlu0 %v416_v63  ;;  %v231_v3 = vpop.xlane.xlu0 %230  ;;  %v419_v41 = vsel %vm138_vm0, %v329_v52, 0.0  ;;  %v940_v54 = vld [vmem:[#allocation5 + $0x78] sm:$0xff]  ;;  %v942_v58 = vld [vmem:[#allocation5 + $0x88] sm:$0xff]  ;;  %v939_v63 = vld [vmem:[#allocation5 + $0x70] sm:$0xff] }
 0x13b   :  { %v234_v40 = vpop.xlane.xlu1 %233  ;;  %v266_v4 = vmul.f32 0.03125, %v231_v3  ;;  %v314_v28 = vmul.f32 %v3222_v62, %v3222_v62  ;;  %v944_v52 = vld [vmem:[#allocation5 + $0x98] sm:$0xff]  ;;  %v946_v3 = vld [vmem:[#allocation5 + $0xa8] sm:$0xff] }
 0x13c   :  { %v267_v14 = vmul.f32 0.03125, %v234_v40  ;;  %v315_v56 = vmul.f32 %v3225_v53, %v3225_v53  ;;  %v941_v40 = vld [vmem:[#allocation5 + $0x80] sm:$0xff] }
 0x13d   :  { %v3234_v18 = vsub.f32 %v3043_v60, %v266_v4  ;;  %v374_v19 = vsel %vm138_vm0, %v314_v28, 0.0  ;;  %v943_v4 = vld [vmem:[#allocation5 + $0x90] sm:$0xff]  ;;  %v945_v28 = vld [vmem:[#allocation5 + $0xa0] sm:$0xff] }
 0x13e   :  { %v3237_v57 = vsub.f32 %v3045_v61, %v267_v14  ;;  %420 = vadd.xlane.f32.xlu1 %v419_v41  ;;  %375 = vadd.xlane.f32.xlu0 %v374_v19  ;;  %v377_v22 = vsel %vm138_vm0, %v315_v56, 0.0  ;;  %v926_v61 = vld [vmem:[#allocation5 + $0x8] sm:$0xff]  ;;  %v948_v41 = vld [vmem:[#allocation5 + $0xb8] sm:$0xff] }
 0x13f   :  { %v330_v23 = vmul.f32 %v3234_v18, %v3234_v18  ;;  %v950_v14 = vld [vmem:[#allocation5 + $0xc8] sm:$0xff]  ;;  %v952_v56 = vld [vmem:[#allocation5 + $0xd8] sm:$0xff] }
 0x140   :  { %v331_v0 = vmul.f32 %v3237_v57, %v3237_v57 }
 0x141   :  { %v422_v44 = vsel %vm138_vm0, %v330_v23, 0.0  ;;  %v947_v23 = vld [vmem:[#allocation5 + $0xb0] sm:$0xff] }
 0x142   :  { %378 = vadd.xlane.f32.xlu1 %v377_v22  ;;  %423 = vadd.xlane.f32.xlu0 %v422_v44  ;;  %v425_v60 = vsel %vm138_vm0, %v331_v0, 0.0  ;;  %v954_v44 = vld [vmem:[#allocation5 + $0xe8] sm:$0xff] }
 0x146   :  { %426 = vadd.xlane.f32.xlu1 %v425_v60 }
 0x157   :  { %964 = vperm.xlu1 %2194, %v926_v61  }
 0x158   :  { %959 = vperm.xlu0 %2193, %v925_v39  }
 0x15b   :  { %969 = vperm.xlu1 %2194, %v927_v32  }
 0x15c   :  { %1004 = vperm.xlu0 %2193, %v934_v42   ;;  %v956_v42 = vld [vmem:[#allocation5 + $0xf8] sm:$0xff] }
 0x15f   :  { %974 = vperm.xlu1 %2194, %v928_v34  }
 0x160   :  { %1014 = vperm.xlu0 %2193, %v936_v48  }
 0x163   :  { %979 = vperm.xlu1 %2194, %v929_v35   ;;  %v949_v35 = vld [vmem:[#allocation5 + $0xc0] sm:$0xff] }
 0x164   :  { %1024 = vperm.xlu0 %2193, %v938_v36  }
 0x167   :  { %984 = vperm.xlu1 %2194, %v930_v38  }
 0x168   :  { %1034 = vperm.xlu0 %2193, %v940_v54  }
 0x16b   :  { %989 = vperm.xlu1 %2194, %v931_v20  }
 0x16c   :  { %1044 = vperm.xlu0 %2193, %v942_v58  }
 0x16f   :  { %994 = vperm.xlu1 %2194, %v932_v47  }
 0x170   :  { %1054 = vperm.xlu0 %2193, %v944_v52  }
 0x173   :  { %999 = vperm.xlu1 %2194, %v933_v50   ;;  %v951_v50 = vld [vmem:[#allocation5 + $0xd0] sm:$0xff] }
 0x174   :  { %1064 = vperm.xlu0 %2193, %v946_v3   ;;  %v953_v3 = vld [vmem:[#allocation5 + $0xe0] sm:$0xff] }
 0x177   :  { %1009 = vperm.xlu1 %2194, %v935_v8  }
 0x178   :  { %1074 = vperm.xlu0 %2193, %v948_v41  }
 0x17b   :  { %1019 = vperm.xlu1 %2194, %v937_v24  }
 0x17c   :  { %1084 = vperm.xlu0 %2193, %v950_v14  }
 0x17f   :  { %1029 = vperm.xlu1 %2194, %v939_v63  }
 0x180   :  { %1094 = vperm.xlu0 %2193, %v952_v56  }
 0x183   :  { %1039 = vperm.xlu1 %2194, %v941_v40  }
 0x184   :  { %1104 = vperm.xlu0 %2193, %v954_v44  }
 0x187   :  { %1049 = vperm.xlu1 %2194, %v943_v4  }
 0x188   :  { %1114 = vperm.xlu0 %2193, %v956_v42  }
 0x18b   :  { %1059 = vperm.xlu1 %2194, %v945_v28  }
 0x18f   :  { %1069 = vperm.xlu1 %2194, %v947_v23   ;;  %v3248_v23 = vld [vmem:[#allocation7] ss:$0 sm:$0xff] }
 0x193   :  { %v334_v19 = vpop.xlane.xlu0 %333  ;;  %1079 = vperm.xlu1 %2194, %v949_v35  }
 0x194   :  { %v428_v22 = vmul.f32 0.03125, %v334_v19 }
 0x196   :  { %v460_v0 = vadd.f32 1e-05, %v428_v22 }
 0x197   :  { %v337_v60 = vpop.xlane.xlu1 %336  ;;  %v382_v61 = vpop.xlane.xlu0 %381  ;;  %1089 = vperm.xlu1 %2194, %v951_v50  }
 0x198   :  { %2273 = vrsqrt.f32 %v460_v0  ;;  %v429_v32 = vmul.f32 0.03125, %v337_v60  ;;  %v444_v34 = vmul.f32 0.03125, %v382_v61  ;;  %v955_v0 = vld [vmem:[#allocation5 + $0xf0] sm:$0xff] }
 0x19a   :  { %v461_v38 = vadd.f32 1e-05, %v429_v32  ;;  %v476_v39 = vadd.f32 1e-05, %v444_v34 }
 0x19b   :  { %v385_v20 = vpop.xlane.xlu1 %384  ;;  %v340_v48 = vpop.xlane.xlu0 %339  ;;  %1099 = vperm.xlu1 %2194, %v953_v3  }
 0x19c   :  { %2275 = vrsqrt.f32 %v461_v38  ;;  %v445_v47 = vmul.f32 0.03125, %v385_v20  ;;  %v430_v36 = vmul.f32 0.03125, %v340_v48  ;;  %v3253_v48 = vld [vmem:[#allocation8] ss:$0 sm:$0xff] }
 0x19d   :  { %2277 = vrsqrt.f32 %v476_v39 }
 0x19e   :  { %v477_v54 = vadd.f32 1e-05, %v445_v47  ;;  %v462_v8 = vadd.f32 1e-05, %v430_v36 }
 0x19f   :  { %v343_v58 = vpop.xlane.xlu1 %342  ;;  %v388_v24 = vpop.xlane.xlu0 %387  ;;  %1109 = vperm.xlu1 %2194, %v955_v0  }
 0x1a0   :  { %2279 = vrsqrt.f32 %v477_v54  ;;  %v431_v52 = vmul.f32 0.03125, %v343_v58  ;;  %v446_v63 = vmul.f32 0.03125, %v388_v24 }
 0x1a1   :  { %2281 = vrsqrt.f32 %v462_v8 }
 0x1a2   :  { %v2274_v40 = vpop.eup %2273  ;;  %v463_v41 = vadd.f32 1e-05, %v431_v52  ;;  %v478_v4 = vadd.f32 1e-05, %v446_v63 }
 0x1a3   :  { %v524_v14 = vmul.f32 %v2274_v40, %v3052_v10  ;;  %v391_v28 = vpop.xlane.xlu1 %390  ;;  %v346_v56 = vpop.xlane.xlu0 %345 }
 0x1a4   :  { %2283 = vrsqrt.f32 %v463_v41  ;;  %v447_v19 = vmul.f32 0.03125, %v391_v28  ;;  %v432_v22 = vmul.f32 0.03125, %v346_v56 }
 0x1a5   :  { %2285 = vrsqrt.f32 %v478_v4  ;;  %v562_v10 = vmul.f32 %v3248_v23, %v524_v14 }
 0x1a6   :  { %v2276_v44 = vpop.eup %2275  ;;  %v479_v60 = vadd.f32 1e-05, %v447_v19  ;;  %v464_v61 = vadd.f32 1e-05, %v432_v22 }
 0x1a7   :  { %v2278_v32 = vpop.eup %2277  ;;  %v349_v34 = vpop.xlane.xlu1 %348  ;;  %v525_v38 = vmul.f32 %v2276_v44, %v3062_v26  ;;  %v600_v26 = vadd.f32 %v3253_v48, %v562_v10 }
 0x1a8   :  { %v394_v35 = vpop.xlane.xlu0 %393  ;;  %v540_v39 = vmul.f32 %v2278_v32, %v3055_v11  ;;  %2287 = vrsqrt.f32 %v479_v60  ;;  %v433_v42 = vmul.f32 0.03125, %v349_v34 }
 0x1a9   :  { %v448_v20 = vmul.f32 0.03125, %v394_v35  ;;  %2289 = vrsqrt.f32 %v464_v61  ;;  %v563_v47 = vmul.f32 %v3248_v23, %v525_v38 }
 0x1aa   :  { %v2280_v36 = vpop.eup %2279  ;;  %v465_v50 = vadd.f32 1e-05, %v433_v42  ;;  %v578_v63 = vmul.f32 %v3248_v23, %v540_v39 }
 0x1ab   :  { %v480_v54 = vadd.f32 1e-05, %v448_v20  ;;  %v2282_v8 = vpop.eup %2281  ;;  %v397_v58 = vpop.xlane.xlu1 %396  ;;  %v601_v52 = vadd.f32 %v3253_v48, %v563_v47  ;;  %v541_v11 = vmul.f32 %v2280_v36, %v3065_v27 }
 0x1ac   :  { %v352_v24 = vpop.xlane.xlu0 %351  ;;  %v526_v3 = vmul.f32 %v2282_v8, %v3074_v2  ;;  %2291 = vrsqrt.f32 %v465_v50  ;;  %v449_v40 = vmul.f32 0.03125, %v397_v58  ;;  %v616_v60 = vadd.f32 %v3253_v48, %v578_v63 }
 0x1ad   :  { %v434_v41 = vmul.f32 0.03125, %v352_v24  ;;  %2293 = vrsqrt.f32 %v480_v54  ;;  %v632_v4 = vpack.c.bf16 %v601_v52, %v600_v26  ;;  %v579_v14 = vmul.f32 %v3248_v23, %v541_v11 }
 0x1ae   :  { %v2284_v28 = vpop.eup %2283  ;;  %v481_v56 = vadd.f32 1e-05, %v449_v40  ;;  %v564_v61 = vmul.f32 %v3248_v23, %v526_v3 }
 0x1af   :  { %v466_v19 = vadd.f32 1e-05, %v434_v41  ;;  %v2286_v22 = vpop.eup %2285  ;;  %v527_v0 = vmul.f32 %v2284_v28, %v3077_v5  ;;  %v355_v44 = vpop.xlane.xlu1 %354  ;;  %2016 = vmatmul.mubr.msk.bf16.vlgmr.msra.gmra.mrb[0].mxu0 %vm138_vm0, %v632_v4  ;;  %v617_v2 = vadd.f32 %v3253_v48, %v579_v14 }
 0x1b0   :  { %v400_v27 = vpop.xlane.xlu0 %399  ;;  %v542_v32 = vmul.f32 %v2286_v22, %v3086_v55  ;;  %2295 = vrsqrt.f32 %v481_v56  ;;  %v435_v34 = vmul.f32 0.03125, %v355_v44  ;;  %774 = vmatprep.mubr.bf16.mxu0 %v2789_v45  ;;  %v602_v55 = vadd.f32 %v3253_v48, %v564_v61 }
 0x1b1   :  { %v450_v35 = vmul.f32 0.03125, %v400_v27  ;;  %2297 = vrsqrt.f32 %v466_v19  ;;  %v640_v38 = vpack.c.bf16 %v617_v2, %v616_v60  ;;  %v565_v5 = vmul.f32 %v3248_v23, %v527_v0 }
 0x1b2   :  { %v2288_v10 = vpop.eup %2287  ;;  %v467_v39 = vadd.f32 1e-05, %v435_v34  ;;  %v580_v8 = vmul.f32 %v3248_v23, %v542_v32 }
 0x1b3   :  { %v482_v42 = vadd.f32 1e-05, %v450_v35  ;;  %v2290_v20 = vpop.eup %2289  ;;  %v543_v47 = vmul.f32 %v2288_v10, %v3089_v9  ;;  %v403_v36 = vpop.xlane.xlu1 %402  ;;  %2024 = vmatmul.mubr.msk.bf16.vlgmr.msra.gmra.mrb[0].mxu1 %vm138_vm0, %v640_v38  ;;  %v603_v54 = vadd.f32 %v3253_v48, %v565_v5 }
 0x1b4   :  { %v358_v50 = vpop.xlane.xlu0 %357  ;;  %v528_v58 = vmul.f32 %v2290_v20, %v3098_v7  ;;  %2299 = vrsqrt.f32 %v467_v39  ;;  %v451_v24 = vmul.f32 0.03125, %v403_v36  ;;  %854 = vmatprep.mubr.bf16.mxu1 %v2789_v45  ;;  %v618_v7 = vadd.f32 %v3253_v48, %v580_v8 }
 0x1b5   :  { %v436_v26 = vmul.f32 0.03125, %v358_v50  ;;  %2301 = vrsqrt.f32 %v482_v42  ;;  %v633_v52 = vpack.c.bf16 %v603_v54, %v602_v55  ;;  %v581_v9 = vmul.f32 %v3248_v23, %v543_v47 }
 0x1b6   :  { %v2292_v11 = vpop.eup %2291  ;;  %v483_v63 = vadd.f32 1e-05, %v451_v24  ;;  %v566_v56 = vmul.f32 %v3248_v23, %v528_v58 }
 0x1b7   :  { %v468_v3 = vadd.f32 1e-05, %v436_v26  ;;  %v2294_v40 = vpop.eup %2293  ;;  %v529_v41 = vmul.f32 %v2292_v11, %v3101_v13  ;;  %v361_v4 = vpop.xlane.xlu1 %360  ;;  %2017 = vmatmul.mubr.msk.bf16.gmra.mrb[4].mxu0 %vm138_vm0, %v633_v52  ;;  %v619_v28 = vadd.f32 %v3253_v48, %v581_v9 }
 0x1b8   :  { %v406_v14 = vpop.xlane.xlu0 %405  ;;  %v544_v19 = vmul.f32 %v2294_v40, %v3110_v1  ;;  %2303 = vrsqrt.f32 %v483_v63  ;;  %v437_v22 = vmul.f32 0.03125, %v361_v4  ;;  %784 = vmatprep.mubr.bf16.mxu0 %v2789_v45  ;;  %v604_v1 = vadd.f32 %v3253_v48, %v566_v56 }
 0x1b9   :  { %v452_v0 = vmul.f32 0.03125, %v406_v14  ;;  %2305 = vrsqrt.f32 %v468_v3  ;;  %v641_v44 = vpack.c.bf16 %v619_v28, %v618_v7  ;;  %v567_v13 = vmul.f32 %v3248_v23, %v529_v41 }
 0x1ba   :  { %v2296_v27 = vpop.eup %2295  ;;  %v469_v60 = vadd.f32 1e-05, %v437_v22  ;;  %v582_v5 = vmul.f32 %v3248_v23, %v544_v19 }
 0x1bb   :  { %v484_v2 = vadd.f32 1e-05, %v452_v0  ;;  %v2298_v61 = vpop.eup %2297  ;;  %v545_v32 = vmul.f32 %v2296_v27, %v3113_v17  ;;  %v409_v34 = vpop.xlane.xlu1 %408  ;;  %2025 = vmatmul.mubr.msk.bf16.gmra.mrb[4].mxu1 %vm138_vm0, %v641_v44  ;;  %v605_v38 = vadd.f32 %v3253_v48, %v567_v13 }
 0x1bc   :  { %v364_v35 = vpop.xlane.xlu0 %363  ;;  %v530_v10 = vmul.f32 %v2298_v61, %v3122_v43  ;;  %2307 = vrsqrt.f32 %v469_v60  ;;  %v453_v39 = vmul.f32 0.03125, %v409_v34  ;;  %864 = vmatprep.mubr.bf16.mxu1 %v2789_v45  ;;  %v620_v43 = vadd.f32 %v3253_v48, %v582_v5 }
 0x1bd   :  { %v438_v42 = vmul.f32 0.03125, %v364_v35  ;;  %2309 = vrsqrt.f32 %v484_v2  ;;  %v634_v20 = vpack.c.bf16 %v605_v38, %v604_v1  ;;  %v583_v17 = vmul.f32 %v3248_v23, %v545_v32 }
 0x1be   :  { %v2300_v47 = vpop.eup %2299  ;;  %v485_v36 = vadd.f32 1e-05, %v453_v39  ;;  %v568_v26 = vmul.f32 %v3248_v23, %v530_v10 }
 0x1bf   :  { %v470_v50 = vadd.f32 1e-05, %v438_v42  ;;  %v2302_v55 = vpop.eup %2301  ;;  %v531_v54 = vmul.f32 %v2300_v47, %v3125_v21  ;;  %v367_v8 = vpop.xlane.xlu1 %366  ;;  %2018 = vmatmul.mubr.msk.bf16.gmra.mrb[8].mxu0 %vm138_vm0, %v634_v20  ;;  %v621_v24 = vadd.f32 %v3253_v48, %v583_v17 }
 0x1c0   :  { %v412_v58 = vpop.xlane.xlu0 %411  ;;  %v546_v52 = vmul.f32 %v2302_v55, %v3134_v59  ;;  %2311 = vrsqrt.f32 %v485_v36  ;;  %v439_v9 = vmul.f32 0.03125, %v367_v8  ;;  %794 = vmatprep.mubr.bf16.mxu0 %v2789_v45  ;;  %v606_v59 = vadd.f32 %v3253_v48, %v568_v26 }
 0x1c1   :  { %v454_v11 = vmul.f32 0.03125, %v412_v58  ;;  %2313 = vrsqrt.f32 %v470_v50  ;;  %v642_v63 = vpack.c.bf16 %v621_v24, %v620_v43  ;;  %v569_v21 = vmul.f32 %v3248_v23, %v531_v54 }
 0x1c2   :  { %v2304_v3 = vpop.eup %2303  ;;  %v471_v40 = vadd.f32 1e-05, %v439_v9  ;;  %v584_v19 = vmul.f32 %v3248_v23, %v546_v52 }
 0x1c3   :  { %v486_v41 = vadd.f32 1e-05, %v454_v11  ;;  %v2306_v4 = vpop.eup %2305  ;;  %v547_v14 = vmul.f32 %v2304_v3, %v3137_v25  ;;  %v415_v7 = vpop.xlane.xlu1 %414  ;;  %2026 = vmatmul.mubr.msk.bf16.gmra.mrb[8].mxu1 %vm138_vm0, %v642_v63  ;;  %v607_v56 = vadd.f32 %v3253_v48, %v569_v21 }
 0x1c4   :  { %v370_v28 = vpop.xlane.xlu0 %369  ;;  %v532_v22 = vmul.f32 %v2306_v4, %v3146_v15  ;;  %2315 = vrsqrt.f32 %v471_v40  ;;  %v455_v0 = vmul.f32 0.03125, %v415_v7  ;;  %874 = vmatprep.mubr.bf16.mxu1 %v2789_v45  ;;  %v622_v15 = vadd.f32 %v3253_v48, %v584_v19 }
 0x1c5   :  { %v440_v44 = vmul.f32 0.03125, %v370_v28  ;;  %2317 = vrsqrt.f32 %v486_v41  ;;  %v635_v13 = vpack.c.bf16 %v607_v56, %v606_v59  ;;  %v585_v25 = vmul.f32 %v3248_v23, %v547_v14 }
 0x1c6   :  { %v2308_v27 = vpop.eup %2307  ;;  %v487_v60 = vadd.f32 1e-05, %v455_v0  ;;  %v570_v38 = vmul.f32 %v3248_v23, %v532_v22 }
 0x1c7   :  { %v472_v2 = vadd.f32 1e-05, %v440_v44  ;;  %v2310_v61 = vpop.eup %2309  ;;  %v533_v32 = vmul.f32 %v2308_v27, %v3149_v29  ;;  %v373_v34 = vpop.xlane.xlu1 %372  ;;  %2019 = vmatmul.mubr.msk.bf16.gmra.mrb[12].mxu0 %vm138_vm0, %v635_v13  ;;  %v623_v1 = vadd.f32 %v3253_v48, %v585_v25 }
 0x1c8   :  { %v418_v35 = vpop.xlane.xlu0 %417  ;;  %v548_v5 = vmul.f32 %v2310_v61, %v3158_v31  ;;  %2319 = vrsqrt.f32 %v487_v60  ;;  %v441_v10 = vmul.f32 0.03125, %v373_v34  ;;  %804 = vmatprep.mubr.bf16.mxu0 %v2789_v45  ;;  %v608_v54 = vadd.f32 %v3253_v48, %v570_v38 }
 0x1c9   :  { %v456_v39 = vmul.f32 0.03125, %v418_v35  ;;  %2321 = vrsqrt.f32 %v472_v2  ;;  %v643_v42 = vpack.c.bf16 %v623_v1, %v622_v15  ;;  %v571_v29 = vmul.f32 %v3248_v23, %v533_v32 }
 0x1ca   :  { %v2312_v20 = vpop.eup %2311  ;;  %v473_v17 = vadd.f32 1e-05, %v441_v10  ;;  %v586_v58 = vmul.f32 %v3248_v23, %v548_v5 }
 0x1cb   :  { %v488_v47 = vadd.f32 1e-05, %v456_v39  ;;  %v2314_v36 = vpop.eup %2313  ;;  %v421_v50 = vpop.xlane.xlu1 %420  ;;  %2027 = vmatmul.mubr.msk.bf16.gmra.mrb[12].mxu1 %vm138_vm0, %v643_v42  ;;  %v609_v31 = vadd.f32 %v3253_v48, %v571_v29  ;;  %v549_v8 = vmul.f32 %v2312_v20, %v3161_v33 }
 0x1cc   :  { %v376_v55 = vpop.xlane.xlu0 %375  ;;  %v534_v43 = vmul.f32 %v2314_v36, %v3170_v37  ;;  %2323 = vrsqrt.f32 %v473_v17  ;;  %v457_v24 = vmul.f32 0.03125, %v421_v50  ;;  %884 = vmatprep.mubr.bf16.mxu1 %v2789_v45  ;;  %v624_v37 = vadd.f32 %v3253_v48, %v586_v58 }
 0x1cd   :  { %v442_v26 = vmul.f32 0.03125, %v376_v55  ;;  %2325 = vrsqrt.f32 %v488_v47  ;;  %v636_v52 = vpack.c.bf16 %v609_v31, %v608_v54  ;;  %v587_v9 = vmul.f32 %v3248_v23, %v549_v8 }
 0x1ce   :  { %v2316_v11 = vpop.eup %2315  ;;  %v489_v63 = vadd.f32 1e-05, %v457_v24  ;;  %v572_v14 = vmul.f32 %v3248_v23, %v534_v43 }
 0x1cf   :  { %v474_v21 = vadd.f32 1e-05, %v442_v26  ;;  %v2318_v3 = vpop.eup %2317  ;;  %v535_v40 = vmul.f32 %v2316_v11, %v3173_v51  ;;  %v379_v33 = vpop.xlane.xlu1 %378  ;;  %2020 = vmatmul.mubr.msk.bf16.gmra.mrb[16].mxu0 %vm138_vm0, %v636_v52  ;;  %v625_v4 = vadd.f32 %v3253_v48, %v587_v9 }
 0x1d0   :  { %v424_v41 = vpop.xlane.xlu0 %423  ;;  %v550_v7 = vmul.f32 %v2318_v3, %v3182_v6  ;;  %2327 = vrsqrt.f32 %v489_v63  ;;  %v443_v28 = vmul.f32 0.03125, %v379_v33  ;;  %814 = vmatprep.mubr.bf16.mxu0 %v2789_v45  ;;  %v610_v6 = vadd.f32 %v3253_v48, %v572_v14 }
 0x1d1   :  { %v458_v59 = vmul.f32 0.03125, %v424_v41  ;;  %2329 = vrsqrt.f32 %v474_v21  ;;  %v644_v56 = vpack.c.bf16 %v625_v4, %v624_v37  ;;  %v573_v51 = vmul.f32 %v3248_v23, %v535_v40  ;;  %v652_v4 = vld [vmem:[#allocation11] sm:$0x3] }
 0x1d2   :  { %v2320_v19 = vpop.eup %2319  ;;  %v475_v22 = vadd.f32 1e-05, %v443_v28  ;;  %v588_v60 = vmul.f32 %v3248_v23, %v550_v7  ;;  %v654_v33 = vlaneseq }
 0x1d3   :  { %v490_v0 = vadd.f32 1e-05, %v458_v59  ;;  %v2322_v44 = vpop.eup %2321  ;;  %v551_v13 = vmul.f32 %v2320_v19, %v3185_v12  ;;  %v427_v25 = vpop.xlane.xlu1 %426  ;;  %2028 = vmatmul.mubr.msk.bf16.gmra.mrb[16].mxu1 %vm138_vm0, %v644_v56  ;;  %v611_v27 = vadd.f32 %v3253_v48, %v573_v51 }
 0x1d4   :  { %v536_v2 = vmul.f32 %v2322_v44, %v3198_v16  ;;  %2331 = vrsqrt.f32 %v475_v22  ;;  %v459_v61 = vmul.f32 0.03125, %v427_v25  ;;  %894 = vmatprep.mubr.bf16.mxu1 %v2789_v45  ;;  %v626_v38 = vadd.f32 %v3253_v48, %v588_v60 }
 0x1d5   :  { %2333 = vrsqrt.f32 %v490_v0  ;;  %v637_v32 = vpack.c.bf16 %v611_v27, %v610_v6  ;;  %v589_v34 = vmul.f32 %v3248_v23, %v551_v13  ;;  %v655_v41 = vshrl.u32 %v654_v33, 7 }
 0x1d6   :  { %v2324_v12 = vpop.eup %2323  ;;  %v491_v35 = vadd.f32 1e-05, %v459_v61  ;;  %v574_v16 = vmul.f32 %v3248_v23, %v536_v2 }
 0x1d7   :  { %v2326_v15 = vpop.eup %2325  ;;  %v537_v1 = vmul.f32 %v2324_v12, %v3201_v30  ;;  %2021 = vmatmul.mubr.msk.bf16.gmra.mrb[20].mxu0 %vm138_vm0, %v637_v32  ;;  %v627_v5 = vadd.f32 %v3253_v48, %v589_v34  ;;  %v656_v37 = vsub.s32 0, %v655_v41  ;;  %v660_v14 = vsub.s32 1, %v655_v41 }
 0x1d8   :  { %v552_v10 = vmul.f32 %v2326_v15, %v3210_v46  ;;  %2335 = vrsqrt.f32 %v491_v35  ;;  %824 = vmatprep.mubr.bf16.mxu0 %v2789_v45  ;;  %v612_v17 = vadd.f32 %v3253_v48, %v574_v16 }
 0x1d9   :  { %v645_v39 = vpack.c.bf16 %v627_v5, %v626_v38  ;;  %v575_v42 = vmul.f32 %v3248_v23, %v537_v1  ;;  %v3377_v7 = vrot.slane %v652_v4, %v656_v37 }
 0x1da   :  { %v2328_v29 = vpop.eup %2327  ;;  %v590_v36 = vmul.f32 %v3248_v23, %v552_v10 }
 0x1db   :  { %v2330_v20 = vpop.eup %2329  ;;  %v553_v30 = vmul.f32 %v2328_v29, %v3213_v49  ;;  %2029 = vmatmul.mubr.msk.bf16.gmra.mrb[20].mxu1 %vm138_vm0, %v645_v39  ;;  %v613_v47 = vadd.f32 %v3253_v48, %v575_v42 }
 0x1dc   :  { %v538_v46 = vmul.f32 %v2330_v20, %v3222_v62  ;;  %904 = vmatprep.mubr.bf16.mxu1 %v2789_v45  ;;  %v628_v49 = vadd.f32 %v3253_v48, %v590_v36 }
 0x1dd   :  { %v638_v50 = vpack.c.bf16 %v613_v47, %v612_v17  ;;  %v591_v55 = vmul.f32 %v3248_v23, %v553_v30 }
 0x1de   :  { %v2332_v54 = vpop.eup %2331  ;;  %v576_v43 = vmul.f32 %v3248_v23, %v538_v46 }
 0x1df   :  { %v2334_v31 = vpop.eup %2333  ;;  %v539_v8 = vmul.f32 %v2332_v54, %v3225_v53  ;;  %2022 = vmatmul.mubr.msk.bf16.gmra.mrb[24].mxu0 %vm138_vm0, %v638_v50  ;;  %v629_v58 = vadd.f32 %v3253_v48, %v591_v55 }
 0x1e0   :  { %v554_v24 = vmul.f32 %v2334_v31, %v3234_v18  ;;  %834 = vmatprep.mubr.bf16.mxu0 %v2789_v45  ;;  %v614_v53 = vadd.f32 %v3253_v48, %v576_v43 }
 0x1e1   :  { %v646_v62 = vpack.c.bf16 %v629_v58, %v628_v49  ;;  %v577_v26 = vmul.f32 %v3248_v23, %v539_v8 }
 0x1e2   :  { %v2336_v52 = vpop.eup %2335  ;;  %v592_v63 = vmul.f32 %v3248_v23, %v554_v24 }
 0x1e3   :  { %v555_v9 = vmul.f32 %v2336_v52, %v3237_v57  ;;  %2030 = vmatmul.mubr.msk.bf16.gmra.mrb[24].mxu1 %vm138_vm0, %v646_v62  ;;  %v615_v11 = vadd.f32 %v3253_v48, %v577_v26 }
 0x1e4   :  { %914 = vmatprep.mubr.bf16.mxu1 %v2789_v45  ;;  %v630_v3 = vadd.f32 %v3253_v48, %v592_v63  ;;  %v3379_v45 = vrot.slane %v652_v4, %v660_v14 }
 0x1e5   :  { %v639_v21 = vpack.c.bf16 %v615_v11, %v614_v53  ;;  %v593_v18 = vmul.f32 %v3248_v23, %v555_v9 }
 0x1e7   :  { %2023 = vmatmul.mubr.msk.bf16.gmra.mrb[28].mxu0 %vm138_vm0, %v639_v21  ;;  %v631_v40 = vadd.f32 %v3253_v48, %v593_v18 }
 0x1e9   :  { %v647_v57 = vpack.c.bf16 %v631_v40, %v630_v3 }
 0x1eb   :  { %2031 = vmatmul.mubr.msk.bf16.gmra.mrb[28].mxu1 %vm138_vm0, %v647_v57 }
 0x282   :  { %v766_v28 = vpop.f32.mrb[0].mxu0 }
 0x283   :  { %v3382_v23 = vadd.f32 %v766_v28, %v3377_v7  ;;  %v768_v59 = vpop.f32.mrb[1].mxu0 }
 0x284   :  { %v769_v56 = vadd.f32 %v768_v59, %v3379_v45  ;;  %v770_v48 = vpop.f32.mrb[2].mxu0 }
 0x285   :  { %v2032_v51 = vmul.f32 -1.442695, %v3382_v23  ;;  %v3387_v19 = vadd.f32 %v770_v48, %v3377_v7  ;;  %v772_v22 = vpop.f32.mrb[3].mxu0 }
 0x286   :  { %v2072_v0 = vmul.f32 -1.442695, %v769_v56  ;;  %v773_v44 = vadd.f32 %v772_v22, %v3379_v45  ;;  %v846_v13 = vpop.f32.mrb[0].mxu1 }
 0x287   :  { %2337 = vpow2.f32 %v2032_v51  ;;  %v2033_v25 = vmul.f32 -1.442695, %v3387_v19  ;;  %v3392_v6 = vadd.f32 %v846_v13, %v3377_v7  ;;  %v848_v27 = vpop.f32.mrb[1].mxu1 }
 0x288   :  { %2339 = vpow2.f32 %v2072_v0  ;;  %v2073_v60 = vmul.f32 -1.442695, %v773_v44  ;;  %v849_v2 = vadd.f32 %v848_v27, %v3379_v45  ;;  %v850_v61 = vpop.f32.mrb[2].mxu1 }
 0x289   :  { %2341 = vpow2.f32 %v2033_v25  ;;  %v2048_v32 = vmul.f32 -1.442695, %v3392_v6  ;;  %v3397_v34 = vadd.f32 %v850_v61, %v3377_v7  ;;  %v852_v12 = vpop.f32.mrb[3].mxu1 }
 0x28a   :  { %2343 = vpow2.f32 %v2073_v60  ;;  %v2088_v35 = vmul.f32 -1.442695, %v849_v2  ;;  %v853_v15 = vadd.f32 %v852_v12, %v3379_v45  ;;  %v776_v1 = vpop.f32.mrb[4].mxu0 }
 0x28b   :  { %2345 = vpow2.f32 %v2048_v32  ;;  %v2049_v38 = vmul.f32 -1.442695, %v3397_v34  ;;  %v3402_v5 = vadd.f32 %v776_v1, %v3377_v7  ;;  %v778_v16 = vpop.f32.mrb[5].mxu0 }
 0x28c   :  { %2347 = vpow2.f32 %v2088_v35  ;;  %v2089_v10 = vmul.f32 -1.442695, %v853_v15  ;;  %v779_v39 = vadd.f32 %v778_v16, %v3379_v45  ;;  %v780_v42 = vpop.f32.mrb[6].mxu0 }
 0x28d   :  { %2349 = vpow2.f32 %v2049_v38  ;;  %v2034_v29 = vmul.f32 -1.442695, %v3402_v5  ;;  %v3407_v20 = vadd.f32 %v780_v42, %v3377_v7  ;;  %v782_v30 = vpop.f32.mrb[7].mxu0 }
 0x28e   :  { %2351 = vpow2.f32 %v2089_v10  ;;  %v2074_v17 = vmul.f32 -1.442695, %v779_v39  ;;  %v783_v47 = vadd.f32 %v782_v30, %v3379_v45  ;;  %v856_v36 = vpop.f32.mrb[4].mxu1 }
 0x28f   :  { %2353 = vpow2.f32 %v2034_v29  ;;  %v2035_v46 = vmul.f32 -1.442695, %v3407_v20  ;;  %v3412_v50 = vadd.f32 %v856_v36, %v3377_v7  ;;  %v858_v55 = vpop.f32.mrb[5].mxu1 }
 0x290   :  { %2355 = vpow2.f32 %v2074_v17  ;;  %v2075_v54 = vmul.f32 -1.442695, %v783_v47  ;;  %v860_v31 = vpop.f32.mrb[6].mxu1  ;;  %v859_v51 = vadd.f32 %v858_v55, %v3379_v45 }
 0x291   :  { %v2338_v8 = vpop.eup %2337  ;;  %2357 = vpow2.f32 %v2035_v46  ;;  %v2050_v49 = vmul.f32 -1.442695, %v3412_v50  ;;  %v862_v58 = vpop.f32.mrb[7].mxu1  ;;  %v3417_v13 = vadd.f32 %v860_v31, %v3377_v7 }
 0x292   :  { %v2340_v43 = vpop.eup %2339  ;;  %v1245_v24 = vadd.f32 1.0, %v2338_v8  ;;  %2359 = vpow2.f32 %v2075_v54  ;;  %v786_v62 = vpop.f32.mrb[8].mxu0  ;;  %v863_v2 = vadd.f32 %v862_v58, %v3379_v45  ;;  %v2090_v16 = vmul.f32 -1.442695, %v859_v51 }
 0x293   :  { %v2342_v26 = vpop.eup %2341  ;;  %v1717_v52 = vadd.f32 1.0, %v2340_v43  ;;  %2361 = vpow2.f32 %v2050_v49  ;;  %v788_v9 = vpop.f32.mrb[9].mxu0  ;;  %v3421_v35 = vadd.f32 %v786_v62, %v3377_v7  ;;  %v2051_v30 = vmul.f32 -1.442695, %v3417_v13 }
 0x294   :  { %v2344_v53 = vpop.eup %2343  ;;  %2363 = vrcp.f32 %v1245_v24  ;;  %v1246_v11 = vadd.f32 1.0, %v2342_v26  ;;  %v790_v63 = vpop.f32.mrb[10].mxu0  ;;  %v789_v10 = vadd.f32 %v788_v9, %v3379_v45  ;;  %v2091_v46 = vmul.f32 -1.442695, %v863_v2 }
 0x295   :  { %v2346_v21 = vpop.eup %2345  ;;  %2365 = vrcp.f32 %v1717_v52  ;;  %v1718_v18 = vadd.f32 1.0, %v2344_v53  ;;  %v792_v3 = vpop.f32.mrb[11].mxu0  ;;  %v3430_v17 = vadd.f32 %v790_v63, %v3377_v7  ;;  %v2036_v49 = vmul.f32 -1.442695, %v3421_v35 }
 0x296   :  { %v2348_v40 = vpop.eup %2347  ;;  %2367 = vrcp.f32 %v1246_v11  ;;  %v1261_v57 = vadd.f32 1.0, %v2346_v21  ;;  %v866_v33 = vpop.f32.mrb[8].mxu1  ;;  %v793_v55 = vadd.f32 %v792_v3, %v3379_v45  ;;  %v2076_v62 = vmul.f32 -1.442695, %v789_v10 }
 0x297   :  { %v2350_v41 = vpop.eup %2349  ;;  %2369 = vrcp.f32 %v1718_v18  ;;  %v1733_v37 = vadd.f32 1.0, %v2348_v40  ;;  %v868_v4 = vpop.f32.mrb[9].mxu1  ;;  %v3440_v58 = vadd.f32 %v866_v33, %v3377_v7  ;;  %v2037_v53 = vmul.f32 -1.442695, %v3430_v17 }
 0x298   :  { %v2352_v14 = vpop.eup %2351  ;;  %2371 = vrcp.f32 %v1261_v57  ;;  %v1262_v28 = vadd.f32 1.0, %v2350_v41  ;;  %v870_v59 = vpop.f32.mrb[10].mxu1  ;;  %v869_v26 = vadd.f32 %v868_v4, %v3379_v45  ;;  %v2077_v3 = vmul.f32 -1.442695, %v793_v55 }
 0x299   :  { %v2354_v56 = vpop.eup %2353  ;;  %2373 = vrcp.f32 %v1733_v37  ;;  %v1734_v48 = vadd.f32 1.0, %v2352_v14  ;;  %v872_v22 = vpop.f32.mrb[11].mxu1  ;;  %v3448_v11 = vadd.f32 %v870_v59, %v3377_v7  ;;  %v2052_v37 = vmul.f32 -1.442695, %v3440_v58 }
 0x29a   :  { %v2356_v0 = vpop.eup %2355  ;;  %2375 = vrcp.f32 %v1262_v28  ;;  %v1247_v44 = vadd.f32 1.0, %v2354_v56  ;;  %v796_v25 = vpop.f32.mrb[12].mxu0  ;;  %v873_v40 = vadd.f32 %v872_v22, %v3379_v45  ;;  %v2092_v59 = vmul.f32 -1.442695, %v869_v26 }
 0x29b   :  { %v2358_v27 = vpop.eup %2357  ;;  %2377 = vrcp.f32 %v1734_v48  ;;  %v1719_v60 = vadd.f32 1.0, %v2356_v0  ;;  %v798_v61 = vpop.f32.mrb[13].mxu0  ;;  %v3462_v4 = vadd.f32 %v796_v25, %v3377_v7  ;;  %v2053_v22 = vmul.f32 -1.442695, %v3448_v11 }
 0x29c   :  { %v2360_v32 = vpop.eup %2359  ;;  %2379 = vrcp.f32 %v1247_v44  ;;  %v1248_v12 = vadd.f32 1.0, %v2358_v27  ;;  %v3423_v15 = vpop.f32.mrb[14].mxu0  ;;  %v799_v56 = vadd.f32 %v798_v61, %v3379_v45  ;;  %v2093_v27 = vmul.f32 -1.442695, %v873_v40 }
 0x29d   :  { %v2362_v1 = vpop.eup %2361  ;;  %2381 = vrcp.f32 %v1719_v60  ;;  %v1720_v38 = vadd.f32 1.0, %v2360_v32  ;;  %v3426_v39 = vpop.f32.mrb[15].mxu0  ;;  %v2038_v32 = vmul.f32 -1.442695, %v3462_v4 }
 0x29e   :  { %v2364_v42 = vpop.eup %2363  ;;  %2383 = vrcp.f32 %v1248_v12  ;;  %v1263_v29 = vadd.f32 1.0, %v2362_v1  ;;  %v3432_v47 = vpop.f32.mrb[12].mxu1  ;;  %v803_v40 = vadd.f32 %v3426_v39, %v3379_v45 }
 0x29f   :  { %v2366_v36 = vpop.eup %2365  ;;  %2385 = vrcp.f32 %v1720_v38  ;;  %1373 = vrot.lane.b32.xlu1 %v2364_v42, %s2790_s5  ;;  %v3436_v54 = vpop.f32.mrb[13].mxu1  ;;  %v2078_v38 = vmul.f32 -1.442695, %v799_v56 }
 0x2a0   :  { %v2368_v31 = vpop.eup %2367  ;;  %v2144_v8 = vpack.c.bf16 %v2366_v36, %v2366_v36  ;;  %2387 = vrcp.f32 %v1263_v29  ;;  %v3442_v43 = vpop.f32.mrb[14].mxu1 }
 0x2a1   :  { %v2370_v24 = vpop.eup %2369  ;;  %2389 = vpow2.f32 %v2090_v16  ;;  %v3450_v63 = vpop.f32.mrb[15].mxu1 }
 0x2a2   :  { %v2372_v52 = vpop.eup %2371  ;;  %1942 = vst.msk [vmem:[#allocation14] sm:$0xf] %vm1941_vm1, %v2144_v8  ;;  %v2145_v9 = vpack.c.bf16 %v2370_v24, %v2370_v24  ;;  %2391 = vpow2.f32 %v2051_v30  ;;  %v3452_v21 = vpop.f32.mrb[16].mxu0 }
 0x2a3   :  { %v2374_v18 = vpop.eup %2373  ;;  %2393 = vpow2.f32 %v2091_v46  ;;  %1375 = vrot.lane.b32.xlu1 %v2368_v31, %s2790_s5  ;;  %1405 = vrot.lane.b32.xlu0 %v2372_v52, %s2790_s5  ;;  %v3457_v57 = vpop.f32.mrb[17].mxu0 }
 0x2a4   :  { %v2376_v33 = vpop.eup %2375  ;;  %1943 = vst.msk [vmem:[#allocation14 + $0x4] sm:$0xf] %vm1941_vm1, %v2145_v9  ;;  %v2160_v41 = vpack.c.bf16 %v2374_v18, %v2374_v18  ;;  %2395 = vpow2.f32 %v2036_v49  ;;  %v3464_v14 = vpop.f32.mrb[18].mxu0 }
 0x2a5   :  { %v2378_v28 = vpop.eup %2377  ;;  %2397 = vpow2.f32 %v2076_v62  ;;  %v3469_v0 = vpop.f32.mrb[19].mxu0 }
 0x2a6   :  { %v2380_v48 = vpop.eup %2379  ;;  %1958 = vst.msk [vmem:[#allocation14 + $0x40] sm:$0xf] %vm1941_vm1, %v2160_v41  ;;  %v2161_v51 = vpack.c.bf16 %v2378_v28, %v2378_v28  ;;  %2399 = vpow2.f32 %v2037_v53  ;;  %v3471_v44 = vpop.f32.mrb[16].mxu1 }
 0x2a7   :  { %v2382_v25 = vpop.eup %2381  ;;  %2401 = vpow2.f32 %v2077_v3  ;;  %1407 = vrot.lane.b32.xlu0 %v2376_v33, %s2790_s5  ;;  %1377 = vrot.lane.b32.xlu1 %v2380_v48, %s2790_s5  ;;  %v3475_v60 = vpop.f32.mrb[17].mxu1  ;;  %v3497_v3 = vadd.f32 %v3423_v15, %v3377_v7 }
 0x2a8   :  { %v2384_v2 = vpop.eup %2383  ;;  %1959 = vst.msk [vmem:[#allocation14 + $0x44] sm:$0xf] %vm1941_vm1, %v2161_v51  ;;  %v2146_v61 = vpack.c.bf16 %v2382_v25, %v2382_v25  ;;  %2403 = vpow2.f32 %v2052_v37  ;;  %v890_v12 = vpop.f32.mrb[18].mxu1 }
 0x2a9   :  { %v2386_v1 = vpop.eup %2385  ;;  %2405 = vpow2.f32 %v2092_v59  ;;  %v892_v42 = vpop.f32.mrb[19].mxu1  ;;  %v3481_v36 = vadd.f32 %v890_v12, %v3377_v7  ;;  %3857 = vst [vmem:[#allocation22_spill] sm:$0xff] %v3497_v3  ;;  %v3505_v59 = vadd.f32 %v3432_v47, %v3377_v7  ;;  %v879_v47 = vadd.f32 %v3436_v54, %v3379_v45 }
 0x2aa   :  { %v2388_v16 = vpop.eup %2387  ;;  %1944 = vst.msk [vmem:[#allocation14 + $0x8] sm:$0xf] %vm1941_vm1, %v2146_v61  ;;  %v2147_v10 = vpack.c.bf16 %v2386_v1, %v2386_v1  ;;  %2407 = vpow2.f32 %v2053_v22  ;;  %v816_v29 = vpop.f32.mrb[20].mxu0  ;;  %v3484_v46 = vadd.f32 %v892_v42, %v3379_v45  ;;  %v3527_v54 = vadd.f32 %v3442_v43, %v3377_v7 }
 0x2ab   :  { %v2390_v30 = vpop.eup %2389  ;;  %2409 = vpow2.f32 %v2093_v27  ;;  %v3487_v55 = vadd.f32 %v816_v29, %v3377_v7  ;;  %1379 = vrot.lane.b32.xlu1 %v2384_v2, %s2790_s5  ;;  %1409 = vrot.lane.b32.xlu0 %v2388_v16, %s2790_s5  ;;  %v818_v31 = vpop.f32.mrb[21].mxu0  ;;  %v2079_v16 = vmul.f32 -1.442695, %v803_v40 }
 0x2ac   :  { %v2392_v8 = vpop.eup %2391  ;;  %1945 = vst.msk [vmem:[#allocation14 + $0xc] sm:$0xf] %vm1941_vm1, %v2147_v10  ;;  %v1735_v49 = vadd.f32 1.0, %v2390_v30  ;;  %2411 = vpow2.f32 %v2038_v32  ;;  %v3493_v24 = vadd.f32 %v818_v31, %v3379_v45  ;;  %v820_v62 = vpop.f32.mrb[22].mxu0  ;;  %v3523_v30 = vmul.f32 -1.442695, %v3505_v59 }
 0x2ad   :  { %v2394_v26 = vpop.eup %2393  ;;  %v1264_v52 = vadd.f32 1.0, %v2392_v8  ;;  %2413 = vpow2.f32 %v2078_v38  ;;  %v822_v9 = vpop.f32.mrb[23].mxu0  ;;  %v3508_v56 = vadd.f32 %v820_v62, %v3377_v7  ;;  %v2039_v38 = vmul.f32 -1.442695, %v3497_v3 }
 0x2ae   :  { %v2396_v53 = vpop.eup %2395  ;;  %2415 = vrcp.f32 %v1735_v49  ;;  %v1736_v18 = vadd.f32 1.0, %v2394_v26  ;;  %v896_v33 = vpop.f32.mrb[20].mxu1  ;;  %v3511_v22 = vadd.f32 %v822_v9, %v3379_v45 }
 0x2af   :  { %v2398_v41 = vpop.eup %2397  ;;  %v3501_v37 = vpop.permute.xlu1 %964  ;;  %2417 = vrcp.f32 %v1264_v52  ;;  %v1249_v28 = vadd.f32 1.0, %v2396_v53  ;;  %v3514_v39 = vadd.f32 %v896_v33, %v3377_v7 }
 0x2b0   :  { %v898_v48 = vpop.f32.mrb[21].mxu1  ;;  %v2400_v51 = vpop.eup %2399  ;;  %2419 = vrcp.f32 %v1736_v18  ;;  %v1721_v15 = vadd.f32 1.0, %v2398_v41 }
 0x2b1   :  { %v900_v25 = vpop.f32.mrb[22].mxu1  ;;  %v2402_v27 = vpop.eup %2401  ;;  %2421 = vrcp.f32 %v1249_v28  ;;  %v1250_v2 = vadd.f32 1.0, %v2400_v51  ;;  %v3519_v61 = vadd.f32 %v898_v48, %v3379_v45  ;;  %v2094_v48 = vmul.f32 -1.442695, %v879_v47 }
 0x2b2   :  { %v902_v32 = vpop.f32.mrb[23].mxu1  ;;  %v2404_v12 = vpop.eup %2403  ;;  %2423 = vrcp.f32 %v1721_v15  ;;  %v1722_v1 = vadd.f32 1.0, %v2402_v27  ;;  %v3530_v62 = vadd.f32 %v900_v25, %v3377_v7  ;;  %v883_v51 = vadd.f32 %v3450_v63, %v3379_v45 }
 0x2b3   :  { %v826_v10 = vpop.f32.mrb[24].mxu0  ;;  %v2406_v42 = vpop.eup %2405  ;;  %2425 = vrcp.f32 %v1250_v2  ;;  %v1265_v29 = vadd.f32 1.0, %v2404_v12  ;;  %v3533_v26 = vadd.f32 %v902_v32, %v3379_v45  ;;  %v3547_v2 = vadd.f32 %v3452_v21, %v3377_v7 }
 0x2b4   :  { %v828_v31 = vpop.f32.mrb[25].mxu0  ;;  %v2408_v8 = vpop.eup %2407  ;;  %2427 = vrcp.f32 %v1722_v1  ;;  %v1737_v49 = vadd.f32 1.0, %v2406_v42  ;;  %v3538_v40 = vadd.f32 %v826_v10, %v3377_v7  ;;  %v809_v32 = vadd.f32 %v3457_v57, %v3379_v45 }
 0x2b5   :  { %v830_v52 = vpop.f32.mrb[26].mxu0  ;;  %v2410_v9 = vpop.eup %2409  ;;  %2429 = vrcp.f32 %v1265_v29  ;;  %v1266_v18 = vadd.f32 1.0, %v2408_v8  ;;  %v3541_v43 = vadd.f32 %v828_v31, %v3379_v45  ;;  %3858 = vst [vmem:[#allocation23_spill] sm:$0xff] %v3547_v2  ;;  %v2055_v47 = vmul.f32 -1.442695, %v3527_v54 }
 0x2b6   :  { %v3535_v53 = vpop.permute.xlu1 %969  ;;  %v832_v33 = vpop.f32.mrb[27].mxu0  ;;  %2431 = vrcp.f32 %v1737_v49  ;;  %v1738_v28 = vadd.f32 1.0, %v2410_v9  ;;  %v3553_v42 = vadd.f32 %v830_v52, %v3377_v7  ;;  %v2095_v9 = vmul.f32 -1.442695, %v883_v51 }
 0x2b7   :  { %v2412_v41 = vpop.eup %2411  ;;  %v906_v15 = vpop.f32.mrb[24].mxu1  ;;  %2433 = vrcp.f32 %v1266_v18  ;;  %v3556_v8 = vadd.f32 %v832_v33, %v3379_v45  ;;  %v3574_v51 = vadd.f32 %v3464_v14, %v3377_v7 }
 0x2b8   :  { %v2414_v25 = vpop.eup %2413  ;;  %v1251_v27 = vadd.f32 1.0, %v2412_v41  ;;  %v908_v12 = vpop.f32.mrb[25].mxu1  ;;  %2435 = vrcp.f32 %v1738_v28  ;;  %3859 = vst [vmem:[#allocation24_spill] sm:$0xff] %v3553_v42  ;;  %v3559_v21 = vadd.f32 %v906_v15, %v3377_v7  ;;  %v2040_v15 = vmul.f32 -1.442695, %v3547_v2 }
 0x2b9   :  { %v2416_v1 = vpop.eup %2415  ;;  %v1723_v10 = vadd.f32 1.0, %v2414_v25  ;;  %v910_v63 = vpop.f32.mrb[26].mxu1  ;;  %v3563_v18 = vadd.f32 %v908_v12, %v3379_v45  ;;  %3860 = vst [vmem:[#allocation25_spill] sm:$0xff] %v3574_v51 }
 0x2ba   :  { %v2418_v29 = vpop.eup %2417  ;;  %v2162_v31 = vpack.c.bf16 %v2416_v1, %v2416_v1  ;;  %2437 = vrcp.f32 %v1251_v27  ;;  %v912_v57 = vpop.f32.mrb[27].mxu1  ;;  %v3566_v52 = vadd.f32 %v910_v63, %v3377_v7  ;;  %v2080_v1 = vmul.f32 -1.442695, %v809_v32 }
 0x2bb   :  { %v2420_v49 = vpop.eup %2419  ;;  %2439 = vrcp.f32 %v1723_v10  ;;  %1411 = vrot.lane.b32.xlu0 %v2418_v29, %s2790_s5  ;;  %v836_v41 = vpop.f32.mrb[28].mxu0  ;;  %v813_v10 = vadd.f32 %v3469_v0, %v3379_v45  ;;  %v3580_v63 = vadd.f32 %v3471_v44, %v3377_v7  ;;  %v3586_v14 = vadd.f32 %v912_v57, %v3379_v45 }
 0x2bc   :  { %v2422_v28 = vpop.eup %2421  ;;  %v3568_v25 = vpop.permute.xlu1 %974  ;;  %1960 = vst.msk [vmem:[#allocation14 + $0x48] sm:$0xf] %vm1941_vm1, %v2162_v31  ;;  %v2163_v33 = vpack.c.bf16 %v2420_v49, %v2420_v49  ;;  %2441 = vpow2.f32 %v2039_v38  ;;  %v889_v44 = vadd.f32 %v3475_v60, %v3379_v45 }
 0x2bd   :  { %v838_v27 = vpop.f32.mrb[29].mxu0  ;;  %v2424_v12 = vpop.eup %2423  ;;  %2443 = vpow2.f32 %v2079_v16  ;;  %3861 = vst [vmem:[#allocation26_spill] sm:$0xff] %v3580_v63  ;;  %1381 = vrot.lane.b32.xlu1 %v2422_v28, %s2790_s5  ;;  %v3589_v16 = vadd.f32 %v836_v41, %v3377_v7  ;;  %v2041_v41 = vmul.f32 -1.442695, %v3574_v51  ;;  %v2056_v60 = vmul.f32 -1.442695, %v3580_v63 }
 0x2be   :  { %v840_v38 = vpop.f32.mrb[30].mxu0  ;;  %v2426_v29 = vpop.eup %2425  ;;  %1961 = vst.msk [vmem:[#allocation14 + $0x4c] sm:$0xf] %vm1941_vm1, %v2163_v33  ;;  %v2148_v31 = vpack.c.bf16 %v2424_v12, %v2424_v12  ;;  %2445 = vpow2.f32 %v3523_v30  ;;  %v3594_v49 = vadd.f32 %v838_v27, %v3379_v45 }
 0x2bf   :  { %3862 = vst [vmem:[#allocation27_spill] sm:$0xff] %v3589_v16  ;;  %v842_v0 = vpop.f32.mrb[31].mxu0  ;;  %v2428_v32 = vpop.eup %2427  ;;  %2447 = vpow2.f32 %v2094_v48  ;;  %v3597_v28 = vadd.f32 %v840_v38, %v3377_v7  ;;  %v2081_v48 = vmul.f32 -1.442695, %v813_v10 }
 0x2c0   :  { %v916_v33 = vpop.f32.mrb[28].mxu1  ;;  %v2430_v30 = vpop.eup %2429  ;;  %1946 = vst.msk [vmem:[#allocation14 + $0x10] sm:$0xf] %vm1941_vm1, %v2148_v31  ;;  %v2149_v57 = vpack.c.bf16 %v2428_v32, %v2428_v32  ;;  %2449 = vpow2.f32 %v2055_v47  ;;  %v3605_v27 = vadd.f32 %v842_v0, %v3379_v45 }
 0x2c1   :  { %3863 = vst [vmem:[#allocation28_spill] sm:$0xff] %v3597_v28  ;;  %v918_v12 = vpop.f32.mrb[29].mxu1  ;;  %v2432_v2 = vpop.eup %2431  ;;  %2451 = vpow2.f32 %v2095_v9  ;;  %1383 = vrot.lane.b32.xlu1 %v2426_v29, %s2790_s5  ;;  %1413 = vrot.lane.b32.xlu0 %v2430_v30, %s2790_s5  ;;  %v3611_v9 = vadd.f32 %v916_v33, %v3377_v7  ;;  %v2096_v30 = vmul.f32 -1.442695, %v889_v44 }
 0x2c2   :  { %v920_v38 = vpop.f32.mrb[30].mxu1  ;;  %v2434_v3 = vpop.eup %2433  ;;  %1947 = vst.msk [vmem:[#allocation14 + $0x14] sm:$0xf] %vm1941_vm1, %v2149_v57  ;;  %v2164_v47 = vpack.c.bf16 %v2432_v2, %v2432_v2  ;;  %2453 = vpow2.f32 %v2040_v15  ;;  %v3614_v10 = vadd.f32 %v918_v12, %v3379_v45  ;;  %v2057_v15 = vmul.f32 -1.442695, %v3481_v36 }
 0x2c3   :  { %v3607_v31 = vpop.permute.xlu1 %979  ;;  %3864 = vst [vmem:[#allocation29_spill] sm:$0xff] %v3611_v9  ;;  %v922_v29 = vpop.f32.mrb[31].mxu1  ;;  %2455 = vpow2.f32 %v2080_v1  ;;  %v3617_v0 = vadd.f32 %v920_v38, %v3377_v7 }
 0x2c4   :  { %v2436_v32 = vpop.eup %2435  ;;  %v3620_v51 = vadd.f32 %v922_v29, %v3379_v45  ;;  %1962 = vst.msk [vmem:[#allocation14 + $0x50] sm:$0xf] %vm1941_vm1, %v2164_v47  ;;  %2457 = vpow2.f32 %v2041_v41 }
 0x2c5   :  { %3865 = vst [vmem:[#allocation30_spill] sm:$0xff] %v3617_v0  ;;  %v2438_v63 = vpop.eup %2437  ;;  %v2165_v2 = vpack.c.bf16 %v2436_v32, %v2436_v32  ;;  %2459 = vpow2.f32 %v2081_v48  ;;  %1415 = vrot.lane.b32.xlu0 %v2434_v3, %s2790_s5 }
 0x2c6   :  { %v2440_v33 = vpop.eup %2439  ;;  %1385 = vrot.lane.b32.xlu1 %v2438_v63, %s2790_s5  ;;  %2461 = vpow2.f32 %v2056_v60 }
 0x2c7   :  { %v2442_v1 = vpop.eup %2441  ;;  %1963 = vst.msk [vmem:[#allocation14 + $0x54] sm:$0xf] %vm1941_vm1, %v2165_v2  ;;  %v2150_v7 = vpack.c.bf16 %v2440_v33, %v2440_v33  ;;  %2463 = vpow2.f32 %v2096_v30  ;;  %v3627_v12 = vpop.permute.xlu1 %984 }
 0x2c8   :  { %v2444_v45 = vpop.eup %2443  ;;  %v1252_v44 = vadd.f32 1.0, %v2442_v1  ;;  %2465 = vpow2.f32 %v2057_v15 }
 0x2c9   :  { %v2446_v57 = vpop.eup %2445  ;;  %1948 = vst.msk [vmem:[#allocation14 + $0x18] sm:$0xf] %vm1941_vm1, %v2150_v7  ;;  %v1724_v41 = vadd.f32 1.0, %v2444_v45 }
 0x2ca   :  { %v2448_v48 = vpop.eup %2447  ;;  %2467 = vrcp.f32 %v1252_v44  ;;  %v1267_v3 = vadd.f32 1.0, %v2446_v57 }
 0x2cb   :  { %v2450_v38 = vpop.eup %2449  ;;  %2469 = vrcp.f32 %v1724_v41  ;;  %v1739_v63 = vadd.f32 1.0, %v2448_v48  ;;  %v3630_v1 = vpop.permute.xlu1 %989 }
 0x2cc   :  { %v2452_v47 = vpop.eup %2451  ;;  %2471 = vrcp.f32 %v1267_v3  ;;  %v1268_v29 = vadd.f32 1.0, %v2450_v38 }
 0x2cd   :  { %v2454_v60 = vpop.eup %2453  ;;  %2473 = vrcp.f32 %v1739_v63  ;;  %v1740_v32 = vadd.f32 1.0, %v2452_v47  ;;  %v2097_v63 = vmul.f32 -1.442695, %v3484_v46  ;;  %v2083_v46 = vmul.f32 -1.442695, %v3511_v22 }
 0x2ce   :  { %v2456_v30 = vpop.eup %2455  ;;  %2475 = vrcp.f32 %v1268_v29  ;;  %v1253_v2 = vadd.f32 1.0, %v2454_v60  ;;  %v2042_v60 = vmul.f32 -1.442695, %v3487_v55  ;;  %v2059_v22 = vmul.f32 -1.442695, %v3530_v62 }
 0x2cf   :  { %v2458_v33 = vpop.eup %2457  ;;  %2477 = vrcp.f32 %v1740_v32  ;;  %v1725_v15 = vadd.f32 1.0, %v2456_v30  ;;  %v3634_v30 = vpop.permute.xlu1 %994 }
 0x2d0   :  { %v2460_v7 = vpop.eup %2459  ;;  %2479 = vrcp.f32 %v1253_v2  ;;  %v1254_v45 = vadd.f32 1.0, %v2458_v33  ;;  %v2082_v2 = vmul.f32 -1.442695, %v3493_v24  ;;  %v2058_v24 = vmul.f32 -1.442695, %v3514_v39 }
 0x2d1   :  { %v2462_v44 = vpop.eup %2461  ;;  %2481 = vrcp.f32 %v1725_v15  ;;  %v1726_v57 = vadd.f32 1.0, %v2460_v7  ;;  %v2043_v7 = vmul.f32 -1.442695, %v3508_v56 }
 0x2d2   :  { %v2464_v41 = vpop.eup %2463  ;;  %2483 = vrcp.f32 %v1254_v45  ;;  %v1269_v48 = vadd.f32 1.0, %v2462_v44 }
 0x2d3   :  { %v2466_v3 = vpop.eup %2465  ;;  %2485 = vrcp.f32 %v1726_v57  ;;  %v1741_v38 = vadd.f32 1.0, %v2464_v41 }
 0x2d4   :  { %v2468_v47 = vpop.eup %2467  ;;  %2487 = vrcp.f32 %v1269_v48  ;;  %v1270_v29 = vadd.f32 1.0, %v2466_v3  ;;  %v3643_v48 = vpop.permute.xlu0 %959  ;;  %v2098_v3 = vmul.f32 -1.442695, %v3519_v61 }
 0x2d5   :  { %v2470_v32 = vpop.eup %2469  ;;  %2489 = vrcp.f32 %v1741_v38  ;;  %1387 = vrot.lane.b32.xlu1 %v2468_v47, %s2790_s5 }
 0x2d6   :  { %v2472_v33 = vpop.eup %2471  ;;  %v2151_v15 = vpack.c.bf16 %v2470_v32, %v2470_v32  ;;  %2491 = vrcp.f32 %v1270_v29  ;;  %v3648_v29 = vpop.permute.xlu1 %999 }
 0x2d7   :  { %v2474_v45 = vpop.eup %2473  ;;  %2493 = vpow2.f32 %v2097_v63  ;;  %1417 = vrot.lane.b32.xlu0 %v2472_v33, %s2790_s5 }
 0x2d8   :  { %v2476_v44 = vpop.eup %2475  ;;  %1949 = vst.msk [vmem:[#allocation14 + $0x1c] sm:$0xf] %vm1941_vm1, %v2151_v15  ;;  %v2166_v57 = vpack.c.bf16 %v2474_v45, %v2474_v45  ;;  %2495 = vpow2.f32 %v2042_v60  ;;  %v2099_v60 = vmul.f32 -1.442695, %v3533_v26  ;;  %v2084_v15 = vmul.f32 -1.442695, %v3541_v43 }
 0x2d9   :  { %v2478_v41 = vpop.eup %2477  ;;  %2497 = vpow2.f32 %v2082_v2  ;;  %v2044_v2 = vmul.f32 -1.442695, %v3538_v40  ;;  %v2045_v26 = vmul.f32 -1.442695, %v3553_v42 }
 0x2da   :  { %v2480_v38 = vpop.eup %2479  ;;  %1964 = vst.msk [vmem:[#allocation14 + $0x58] sm:$0xf] %vm1941_vm1, %v2166_v57  ;;  %v2167_v63 = vpack.c.bf16 %v2478_v41, %v2478_v41  ;;  %2499 = vpow2.f32 %v2043_v7  ;;  %v2085_v57 = vmul.f32 -1.442695, %v3556_v8 }
 0x2db   :  { %v2482_v47 = vpop.eup %2481  ;;  %2501 = vpow2.f32 %v2083_v46  ;;  %1419 = vrot.lane.b32.xlu0 %v2476_v44, %s2790_s5  ;;  %1389 = vrot.lane.b32.xlu1 %v2480_v38, %s2790_s5  ;;  %v3658_v44 = vpop.permute.xlu0 %1004 }
 0x2dc   :  { %v2484_v32 = vpop.eup %2483  ;;  %1965 = vst.msk [vmem:[#allocation14 + $0x5c] sm:$0xf] %vm1941_vm1, %v2167_v63  ;;  %v2152_v61 = vpack.c.bf16 %v2482_v47, %v2482_v47  ;;  %2503 = vpow2.f32 %v2058_v24 }
 0x2dd   :  { %v2486_v33 = vpop.eup %2485  ;;  %2505 = vpow2.f32 %v2098_v3  ;;  %v3664_v3 = vpop.permute.xlu1 %1009 }
 0x2de   :  { %v2488_v7 = vpop.eup %2487  ;;  %1950 = vst.msk [vmem:[#allocation14 + $0x20] sm:$0xf] %vm1941_vm1, %v2152_v61  ;;  %v2153_v45 = vpack.c.bf16 %v2486_v33, %v2486_v33  ;;  %2507 = vpow2.f32 %v2059_v22 }
 0x2df   :  { %v2490_v46 = vpop.eup %2489  ;;  %2509 = vpow2.f32 %v2099_v60  ;;  %1391 = vrot.lane.b32.xlu1 %v2484_v32, %s2790_s5  ;;  %1421 = vrot.lane.b32.xlu0 %v2488_v7, %s2790_s5  ;;  %v3668_v61 = vpop.permute.xlu0 %1014 }
 0x2e0   :  { %v2492_v24 = vpop.eup %2491  ;;  %1951 = vst.msk [vmem:[#allocation14 + $0x24] sm:$0xf] %vm1941_vm1, %v2153_v45  ;;  %v2168_v43 = vpack.c.bf16 %v2490_v46, %v2490_v46  ;;  %2511 = vpow2.f32 %v2044_v2 }
 0x2e1   :  { %v2494_v41 = vpop.eup %2493  ;;  %2513 = vpow2.f32 %v2084_v15  ;;  %v3670_v45 = vpop.permute.xlu1 %1019 }
 0x2e2   :  { %v2496_v38 = vpop.eup %2495  ;;  %1966 = vst.msk [vmem:[#allocation14 + $0x60] sm:$0xf] %vm1941_vm1, %v2168_v43  ;;  %v1742_v63 = vadd.f32 1.0, %v2494_v41  ;;  %2515 = vpow2.f32 %v2045_v26 }
 0x2e3   :  { %v2498_v22 = vpop.eup %2497  ;;  %v1255_v8 = vadd.f32 1.0, %v2496_v38  ;;  %2517 = vpow2.f32 %v2085_v57  ;;  %1423 = vrot.lane.b32.xlu0 %v2492_v24, %s2790_s5 }
 0x2e4   :  { %v2500_v47 = vpop.eup %2499  ;;  %2519 = vrcp.f32 %v1742_v63  ;;  %v1727_v60 = vadd.f32 1.0, %v2498_v22  ;;  %v3672_v22 = vpop.permute.xlu0 %1024 }
 0x2e5   :  { %v2502_v32 = vpop.eup %2501  ;;  %2521 = vrcp.f32 %v1255_v8  ;;  %v1256_v2 = vadd.f32 1.0, %v2500_v47  ;;  %3866 = vst [vmem:[#allocation31_spill] sm:$0xff] %v3672_v22 }
 0x2e6   :  { %v2504_v33 = vpop.eup %2503  ;;  %2523 = vrcp.f32 %v1727_v60  ;;  %v1728_v15 = vadd.f32 1.0, %v2502_v32 }
 0x2e7   :  { %v2506_v7 = vpop.eup %2505  ;;  %2525 = vrcp.f32 %v1256_v2  ;;  %v1271_v26 = vadd.f32 1.0, %v2504_v33  ;;  %v3674_v2 = vpop.permute.xlu1 %1029 }
 0x2e8   :  { %v2508_v46 = vpop.eup %2507  ;;  %2527 = vrcp.f32 %v1728_v15  ;;  %v1743_v57 = vadd.f32 1.0, %v2506_v7  ;;  %3867 = vst [vmem:[#allocation32_spill] sm:$0xff] %v3674_v2  ;;  %v2060_v15 = vmul.f32 -1.442695, %v3559_v21 }
 0x2e9   :  { %v2510_v24 = vpop.eup %2509  ;;  %2529 = vrcp.f32 %v1271_v26  ;;  %v1272_v43 = vadd.f32 1.0, %v2508_v46  ;;  %v2100_v46 = vmul.f32 -1.442695, %v3563_v18  ;;  %v2046_v18 = vmul.f32 -1.442695, %v3589_v16 }
 0x2ea   :  { %v2512_v41 = vpop.eup %2511  ;;  %2531 = vrcp.f32 %v1743_v57  ;;  %v1744_v38 = vadd.f32 1.0, %v2510_v24 }
 0x2eb   :  { %v2514_v63 = vpop.eup %2513  ;;  %2533 = vrcp.f32 %v1272_v43  ;;  %v1257_v8 = vadd.f32 1.0, %v2512_v41  ;;  %v2061_v43 = vmul.f32 -1.442695, %v3566_v52 }
 0x2ec   :  { %v2516_v47 = vpop.eup %2515  ;;  %2535 = vrcp.f32 %v1744_v38  ;;  %v1729_v60 = vadd.f32 1.0, %v2514_v63  ;;  %v2101_v38 = vmul.f32 -1.442695, %v3586_v14 }
 0x2ed   :  { %v2518_v32 = vpop.eup %2517  ;;  %2537 = vrcp.f32 %v1257_v8  ;;  %v1258_v33 = vadd.f32 1.0, %v2516_v47  ;;  %v3681_v8 = vpop.permute.xlu0 %1034 }
 0x2ee   :  { %v2520_v7 = vpop.eup %2519  ;;  %2539 = vrcp.f32 %v1729_v60  ;;  %v1730_v26 = vadd.f32 1.0, %v2518_v32  ;;  %3868 = vst [vmem:[#allocation33_spill] sm:$0xff] %v3681_v8  ;;  %v2086_v32 = vmul.f32 -1.442695, %v3594_v49 }
 0x2ef   :  { %v2522_v57 = vpop.eup %2521  ;;  %v2169_v24 = vpack.c.bf16 %v2520_v7, %v2520_v7  ;;  %2541 = vrcp.f32 %v1258_v33  ;;  %v3686_v7 = vpop.permute.xlu1 %1039 }
 0x2f0   :  { %v2524_v41 = vpop.eup %2523  ;;  %2543 = vrcp.f32 %v1730_v26  ;;  %1393 = vrot.lane.b32.xlu1 %v2522_v57, %s2790_s5  ;;  %v2047_v26 = vmul.f32 -1.442695, %v3597_v28 }
 0x2f1   :  { %v2526_v63 = vpop.eup %2525  ;;  %1967 = vst.msk [vmem:[#allocation14 + $0x64] sm:$0xf] %vm1941_vm1, %v2169_v24  ;;  %v2154_v47 = vpack.c.bf16 %v2524_v41, %v2524_v41  ;;  %2545 = vpow2.f32 %v2060_v15  ;;  %v2087_v24 = vmul.f32 -1.442695, %v3605_v27 }
 0x2f2   :  { %v2528_v60 = vpop.eup %2527  ;;  %2547 = vpow2.f32 %v2100_v46  ;;  %v2062_v46 = vmul.f32 -1.442695, %v3611_v9 }
 0x2f3   :  { %v2530_v33 = vpop.eup %2529  ;;  %1952 = vst.msk [vmem:[#allocation14 + $0x28] sm:$0xf] %vm1941_vm1, %v2154_v47  ;;  %v2155_v14 = vpack.c.bf16 %v2528_v60, %v2528_v60  ;;  %2549 = vpow2.f32 %v2061_v43  ;;  %v2102_v43 = vmul.f32 -1.442695, %v3614_v10  ;;  %v3696_v60 = vpop.permute.xlu0 %1044 }
 0x2f4   :  { %v2532_v57 = vpop.eup %2531  ;;  %2551 = vpow2.f32 %v2101_v38  ;;  %1395 = vrot.lane.b32.xlu1 %v2526_v63, %s2790_s5  ;;  %1425 = vrot.lane.b32.xlu0 %v2530_v33, %s2790_s5  ;;  %v3698_v38 = vpop.permute.xlu1 %1049  ;;  %v2063_v63 = vmul.f32 -1.442695, %v3617_v0 }
 0x2f5   :  { %v2534_v15 = vpop.eup %2533  ;;  %1953 = vst.msk [vmem:[#allocation14 + $0x2c] sm:$0xf] %vm1941_vm1, %v2155_v14  ;;  %v2170_v49 = vpack.c.bf16 %v2532_v57, %v2532_v57  ;;  %2553 = vpow2.f32 %v2046_v18  ;;  %v2103_v18 = vmul.f32 -1.442695, %v3620_v51 }
 0x2f6   :  { %v2536_v41 = vpop.eup %2535  ;;  %2555 = vpow2.f32 %v2086_v32 }
 0x2f7   :  { %v2538_v47 = vpop.eup %2537  ;;  %1968 = vst.msk [vmem:[#allocation14 + $0x68] sm:$0xf] %vm1941_vm1, %v2170_v49  ;;  %v2171_v27 = vpack.c.bf16 %v2536_v41, %v2536_v41  ;;  %2557 = vpow2.f32 %v2047_v26  ;;  %v3706_v49 = vpop.permute.xlu0 %1054 }
 0x2f8   :  { %v2540_v33 = vpop.eup %2539  ;;  %2559 = vpow2.f32 %v2087_v24  ;;  %1427 = vrot.lane.b32.xlu0 %v2534_v15, %s2790_s5  ;;  %1397 = vrot.lane.b32.xlu1 %v2538_v47, %s2790_s5  ;;  %v3708_v26 = vpop.permute.xlu1 %1059 }
 0x2f9   :  { %v2542_v10 = vpop.eup %2541  ;;  %1969 = vst.msk [vmem:[#allocation14 + $0x6c] sm:$0xf] %vm1941_vm1, %v2171_v27  ;;  %v2156_v32 = vpack.c.bf16 %v2540_v33, %v2540_v33  ;;  %2561 = vpow2.f32 %v2062_v46 }
 0x2fa   :  { %v2544_v14 = vpop.eup %2543  ;;  %2563 = vpow2.f32 %v2102_v43 }
 0x2fb   :  { %v2546_v57 = vpop.eup %2545  ;;  %1954 = vst.msk [vmem:[#allocation14 + $0x30] sm:$0xf] %vm1941_vm1, %v2156_v32  ;;  %v2157_v24 = vpack.c.bf16 %v2544_v14, %v2544_v14  ;;  %2565 = vpow2.f32 %v2063_v63  ;;  %v3713_v33 = vpop.permute.xlu0 %1064 }
 0x2fc   :  { %v2548_v51 = vpop.eup %2547  ;;  %v1273_v15 = vadd.f32 1.0, %v2546_v57  ;;  %2567 = vpow2.f32 %v2103_v18  ;;  %1399 = vrot.lane.b32.xlu1 %v2542_v10, %s2790_s5  ;;  %v3715_v8 = vpop.permute.xlu1 %1069 }
 0x2fd   :  { %v2550_v41 = vpop.eup %2549  ;;  %1955 = vst.msk [vmem:[#allocation14 + $0x34] sm:$0xf] %vm1941_vm1, %v2157_v24  ;;  %v1745_v46 = vadd.f32 1.0, %v2548_v51 }
 0x2fe   :  { %v2552_v47 = vpop.eup %2551  ;;  %2569 = vrcp.f32 %v1273_v15  ;;  %v1274_v43 = vadd.f32 1.0, %v2550_v41 }
 0x2ff   :  { %v2554_v27 = vpop.eup %2553  ;;  %2571 = vrcp.f32 %v1745_v46  ;;  %v1746_v32 = vadd.f32 1.0, %v2552_v47  ;;  %v3717_v28 = vpop.permute.xlu0 %1074 }
 0x300   :  { %v2556_v63 = vpop.eup %2555  ;;  %2573 = vrcp.f32 %v1274_v43  ;;  %v1259_v14 = vadd.f32 1.0, %v2554_v27  ;;  %v3719_v15 = vpop.permute.xlu1 %1079 }
 0x301   :  { %v2558_v18 = vpop.eup %2557  ;;  %2575 = vrcp.f32 %v1746_v32  ;;  %v1731_v10 = vadd.f32 1.0, %v2556_v63 }
 0x302   :  { %v2560_v57 = vpop.eup %2559  ;;  %2577 = vrcp.f32 %v1259_v14  ;;  %v1260_v24 = vadd.f32 1.0, %v2558_v18 }
 0x303   :  { %v2562_v51 = vpop.eup %2561  ;;  %2579 = vrcp.f32 %v1731_v10  ;;  %v1732_v41 = vadd.f32 1.0, %v2560_v57  ;;  %v3721_v63 = vpop.permute.xlu0 %1084 }
 0x304   :  { %v2564_v0 = vpop.eup %2563  ;;  %2581 = vrcp.f32 %v1260_v24  ;;  %v1275_v46 = vadd.f32 1.0, %v2562_v51  ;;  %v3723_v14 = vpop.permute.xlu1 %1089 }
 0x305   :  { %v2566_v47 = vpop.eup %2565  ;;  %2583 = vrcp.f32 %v1732_v41  ;;  %v1747_v43 = vadd.f32 1.0, %v2564_v0 }
 0x306   :  { %v2568_v27 = vpop.eup %2567  ;;  %2585 = vrcp.f32 %v1275_v46  ;;  %v1276_v32 = vadd.f32 1.0, %v2566_v47 }
 0x307   :  { %2587 = vrcp.f32 %v1747_v43  ;;  %v1748_v18 = vadd.f32 1.0, %v2568_v27  ;;  %v3726_v51 = vpop.permute.xlu0 %1094 }
 0x308   :  { %v2570_v2 = vpop.eup %2569  ;;  %v3728_v0 = vpop.permute.xlu1 %1099 }
 0x309   :  { %v2572_v16 = vpop.eup %2571  ;;  %2589 = vrcp.f32 %v1748_v18  ;;  %1429 = vrot.lane.b32.xlu0 %v2570_v2, %s2790_s5 }
 0x30a   :  { %v2574_v10 = vpop.eup %2573  ;;  %v2172_v57 = vpack.c.bf16 %v2572_v16, %v2572_v16  ;;  %2591 = vrcp.f32 %v1276_v32 }
 0x30b   :  { %v2576_v24 = vpop.eup %2575  ;;  %v3734_v27 = vpop.permute.xlu0 %1104 }
 0x30c   :  { %v2578_v41 = vpop.eup %2577  ;;  %1970 = vst.msk [vmem:[#allocation14 + $0x70] sm:$0xf] %vm1941_vm1, %v2172_v57  ;;  %v2173_v46 = vpack.c.bf16 %v2576_v24, %v2576_v24  ;;  %v3736_v32 = vpop.permute.xlu1 %1109 }
 0x30d   :  { %v2580_v47 = vpop.eup %2579  ;;  %1431 = vrot.lane.b32.xlu0 %v2574_v10, %s2790_s5  ;;  %1401 = vrot.lane.b32.xlu1 %v2578_v41, %s2790_s5  ;;  %3869 = vst [vmem:[#allocation34_spill] sm:$0xff] %v3736_v32 }
 0x30e   :  { %v2582_v43 = vpop.eup %2581  ;;  %1971 = vst.msk [vmem:[#allocation14 + $0x74] sm:$0xf] %vm1941_vm1, %v2173_v46  ;;  %v2158_v2 = vpack.c.bf16 %v2580_v47, %v2580_v47 }
 0x30f   :  { %v2584_v16 = vpop.eup %2583  ;;  %v3742_v41 = vpop.permute.xlu0 %1114 }
 0x310   :  { %v2586_v18 = vpop.eup %2585  ;;  %1956 = vst.msk [vmem:[#allocation14 + $0x38] sm:$0xf] %vm1941_vm1, %v2158_v2  ;;  %v2159_v9 = vpack.c.bf16 %v2584_v16, %v2584_v16  ;;  %3870 = vst [vmem:[#allocation35_spill] sm:$0xff] %v3742_v41  ;;  %v1133_v2 = vmul.f32 %v3686_v7, %v3392_v6  ;;  %v1134_v41 = vmul.f32 %v3696_v60, %v3397_v34 }
 0x311   :  { %v2588_v57 = vpop.eup %2587  ;;  %1403 = vrot.lane.b32.xlu1 %v2582_v43, %s2790_s5  ;;  %1433 = vrot.lane.b32.xlu0 %v2586_v18, %s2790_s5  ;;  %v1374_v46 = vpop.permute.xlu1 %1373  ;;  %v1117_v43 = vmul.f32 %v3643_v48, %v3382_v23  ;;  %v1135_v7 = vmul.f32 %v3698_v38, %v3412_v50  ;;  %v1119_v23 = vmul.f32 %v3535_v53, %v3402_v5 }
 0x312   :  { %1957 = vst.msk [vmem:[#allocation14 + $0x3c] sm:$0xf] %vm1941_vm1, %v2159_v9  ;;  %v2174_v10 = vpack.c.bf16 %v2588_v57, %v2588_v57  ;;  %v1137_v5 = vmul.f32 %v3708_v26, %v3440_v58  ;;  %v1121_v53 = vmul.f32 %v3607_v31, %v3421_v35  ;;  %v1139_v31 = vmul.f32 %v3715_v8, %v3505_v59  ;;  %v3872_v59 = vld [vmem:[#allocation26_spill] sm:$0xff] }
 0x313   :  { %v2590_v24 = vpop.eup %2589  ;;  %v1469_v18 = vmul.f32 %v1374_v46, %v1117_v43  ;;  %v1141_v8 = vmul.f32 %v3719_v15, %v3872_v59 }
 0x314   :  { %v2592_v47 = vpop.eup %2591  ;;  %1972 = vst.msk [vmem:[#allocation14 + $0x78] sm:$0xf] %vm1941_vm1, %v2174_v10  ;;  %v2175_v32 = vpack.c.bf16 %v2590_v24, %v2590_v24  ;;  %v1118_v10 = vmul.f32 %v3501_v37, %v3387_v19  ;;  %v1136_v19 = vmul.f32 %v3706_v49, %v3417_v13  ;;  %v1120_v37 = vmul.f32 %v3568_v25, %v3407_v20 }
 0x315   :  { %1435 = vrot.lane.b32.xlu0 %v2592_v47, %s2790_s5  ;;  %v1376_v9 = vpop.permute.xlu1 %1375  ;;  %v1406_v16 = vpop.permute.xlu0 %1405  ;;  %v1138_v13 = vmul.f32 %v3713_v33, %v3448_v11  ;;  %v1122_v20 = vmul.f32 %v3627_v12, %v3430_v17  ;;  %v1123_v11 = vmul.f32 %v3630_v1, %v3462_v4  ;;  %v1140_v12 = vmul.f32 %v3717_v28, %v3527_v54  ;;  %v3873_v4 = vld [vmem:[#allocation23_spill] sm:$0xff] }
 0x316   :  { %1973 = vst.msk [vmem:[#allocation14 + $0x7c] sm:$0xf] %vm1941_vm1, %v2175_v32  ;;  %v1485_v57 = vmul.f32 %v1406_v16, %v1133_v2  ;;  %v1470_v22 = vmul.f32 %v1376_v9, %v1118_v10  ;;  %v1125_v1 = vmul.f32 %v3648_v29, %v3873_v4 }
 0x318   :  { %v2195_v24 = vpack.i.bf16 %v1485_v57, %v1469_v18 }
 0x319   :  { %v1408_v47 = vpop.permute.xlu0 %1407  ;;  %v1378_v6 = vpop.permute.xlu1 %1377 }
 0x31a   :  { %v1486_v42 = vmul.f32 %v1408_v47, %v1134_v41  ;;  %v1471_v46 = vmul.f32 %v1378_v6, %v1119_v23 }
 0x31c   :  { %v2197_v48 = vpack.i.bf16 %v1486_v42, %v1470_v22 }
 0x31d   :  { %v1410_v32 = vpop.permute.xlu0 %1409  ;;  %v1380_v34 = vpop.permute.xlu1 %1379 }
 0x31e   :  { %v1487_v2 = vmul.f32 %v1410_v32, %v1135_v7  ;;  %v1472_v41 = vmul.f32 %v1380_v34, %v1120_v37 }
 0x320   :  { %v2199_v43 = vpack.i.bf16 %v1487_v2, %v1471_v46 }
 0x32d   :  { %v1412_v60 = vpop.permute.xlu0 %1411 }
 0x32e   :  { %v1488_v9 = vmul.f32 %v1412_v60, %v1136_v19  ;;  %v3874_v19 = vld [vmem:[#allocation25_spill] sm:$0xff] }
 0x32f   :  { %v1382_v16 = vpop.permute.xlu1 %1381  ;;  %v1126_v37 = vmul.f32 %v3658_v44, %v3874_v19  ;;  %v1144_v44 = vmul.f32 %v3726_v51, %v3530_v62 }
 0x330   :  { %v2201_v50 = vpack.i.bf16 %v1488_v9, %v1472_v41  ;;  %v1473_v22 = vmul.f32 %v1382_v16, %v1121_v53 }
 0x333   :  { %v1414_v42 = vpop.permute.xlu0 %1413  ;;  %v1384_v18 = vpop.permute.xlu1 %1383 }
 0x334   :  { %v1489_v38 = vmul.f32 %v1414_v42, %v1137_v5  ;;  %v1474_v57 = vmul.f32 %v1384_v18, %v1122_v20  ;;  %v1127_v5 = vmul.f32 %v3664_v3, %v3487_v55 }
 0x336   :  { %v2203_v25 = vpack.i.bf16 %v1489_v38, %v1473_v22  ;;  %v1128_v22 = vmul.f32 %v3668_v61, %v3508_v56 }
 0x337   :  { %v1416_v49 = vpop.permute.xlu0 %1415 }
 0x338   :  { %v1490_v10 = vmul.f32 %v1416_v49, %v1138_v13  ;;  %v1386_v58 = vpop.permute.xlu1 %1385 }
 0x339   :  { %v1475_v33 = vmul.f32 %v1386_v58, %v1123_v11 }
 0x33a   :  { %2196 = vxpose.xlu1.b32.start [1/16] (narrow) %v2195_v24, 64  ;;  %v2205_v47 = vpack.i.bf16 %v1490_v10, %v1474_v57  ;;  %v3871_v24 = vld [vmem:[#allocation22_spill] sm:$0xff] }
 0x33b   :  { %v1124_v6 = vmul.f32 %v3634_v30, %v3871_v24  ;;  %v1142_v30 = vmul.f32 %v3721_v63, %v3481_v36 }
 0x33e   :  { %2198 = vxpose.xlu1.b32.cont [2/16] (narrow) %v2197_v48, 64 }
 0x342   :  { %2200 = vxpose.xlu1.b32.cont [3/16] (narrow) %v2199_v43, 64 }
 0x346   :  { %2202 = vxpose.xlu1.b32.cont [4/16] (narrow) %v2201_v50, 64  ;;  %v1143_v50 = vmul.f32 %v3723_v14, %v3514_v39 }
 0x347   :  { %v1388_v35 = vpop.permute.xlu1 %1387 }
 0x348   :  { %v1476_v32 = vmul.f32 %v1388_v35, %v1124_v6 }
 0x349   :  { %v1418_v26 = vpop.permute.xlu0 %1417 }
 0x34a   :  { %2204 = vxpose.xlu1.b32.cont [5/16] (narrow) %v2203_v25, 64  ;;  %v1491_v17 = vmul.f32 %v1418_v26, %v1139_v31 }
 0x34c   :  { %v2207_v7 = vpack.i.bf16 %v1491_v17, %v1475_v33 }
 0x34d   :  { %v1390_v23 = vpop.permute.xlu1 %1389  ;;  %v1420_v48 = vpop.permute.xlu0 %1419 }
 0x34e   :  { %2206 = vxpose.xlu1.b32.cont [6/16] (narrow) %v2205_v47, 64  ;;  %v1492_v46 = vmul.f32 %v1420_v48, %v1140_v12  ;;  %v1477_v34 = vmul.f32 %v1390_v23, %v1125_v1 }
 0x350   :  { %v2209_v2 = vpack.i.bf16 %v1492_v46, %v1476_v32 }
 0x351   :  { %v1422_v43 = vpop.permute.xlu0 %1421  ;;  %v1392_v28 = vpop.permute.xlu1 %1391 }
 0x352   :  { %2208 = vxpose.xlu1.b32.cont [7/16] (narrow) %v2207_v7, 64  ;;  %v1493_v54 = vmul.f32 %v1422_v43, %v1141_v8  ;;  %v1478_v9 = vmul.f32 %v1392_v28, %v1126_v37 }
 0x354   :  { %v2211_v60 = vpack.i.bf16 %v1493_v54, %v1477_v34 }
 0x355   :  { %v1424_v41 = vpop.permute.xlu0 %1423 }
 0x356   :  { %2210 = vxpose.xlu1.b32.cont [8/16] (narrow) %v2209_v2, 64  ;;  %v1494_v15 = vmul.f32 %v1424_v41, %v1142_v30 }
 0x358   :  { %v2213_v16 = vpack.i.bf16 %v1494_v15, %v1478_v9 }
 0x35a   :  { %2212 = vxpose.xlu1.b32.cont [9/16] (narrow) %v2211_v60, 64 }
 0x35e   :  { %2214 = vxpose.xlu1.b32.cont [10/16] (narrow) %v2213_v16, 64 }
 0x362   :  { %v1394_v29 = vpop.permute.xlu1 %1393 }
 0x363   :  { %v1479_v36 = vmul.f32 %v1394_v29, %v1127_v5 }
 0x366   :  { %v1426_v53 = vpop.permute.xlu0 %1425  ;;  %v1396_v42 = vpop.permute.xlu1 %1395 }
 0x367   :  { %v1495_v63 = vmul.f32 %v1426_v53, %v1143_v50  ;;  %v1480_v13 = vmul.f32 %v1396_v42, %v1128_v22 }
 0x369   :  { %v2215_v38 = vpack.i.bf16 %v1495_v63, %v1479_v36 }
 0x36a   :  { %v1428_v18 = vpop.permute.xlu0 %1427  ;;  %v1398_v55 = vpop.permute.xlu1 %1397 }
 0x36b   :  { %v1496_v20 = vmul.f32 %v1428_v18, %v1144_v44  ;;  %2216 = vxpose.xlu1.b32.cont [11/16] (narrow) %v2215_v38, 64 }
 0x36d   :  { %v2217_v25 = vpack.i.bf16 %v1496_v20, %v1480_v13 }
 0x36f   :  { %2218 = vxpose.xlu1.b32.cont [12/16] (narrow) %v2217_v25, 64 }
 0x370   :  { %2736 = shalt.err (!%p2733_p10)
}
 0x371   :  { %s2737_s10 = scalar_lea.hbm %s3847_s7, 2048 }
 0x372   :  { %p2738_p11 = scmp.ne.s32.totalorder %s3847_s7, %s2737_s10  ;;  %p2741_p12 = scmp.lt.u32.totalorder %s2737_s10, %s3847_s7 }
 0x374   :  { %p2743_p13 = pnand %p2741_p12, %p2738_p11 }
 0x376   :  { %2746 = shalt.err (!%p2743_p13)
}
 0x377   :  { %s2792_s17 = smov 4   ;;  %v1400_v56 = vpop.permute.xlu1 %1399  ;;  %v1145_v39 = vmul.f32 %v3728_v0, %v3559_v21  ;;  %v1129_v62 = vmul.f32 %v3670_v45, %v3538_v40  ;;  %v1146_v51 = vmul.f32 %v3734_v27, %v3566_v52  ;;  %v3875_v49 = vld [vmem:[#allocation24_spill] sm:$0xff]  ;;  %v3876_v57 = vld [vmem:[#allocation31_spill] sm:$0xff]  ;;  %v3877_v26 = vld [vmem:[#allocation29_spill] sm:$0xff] }
 0x378   :  { %1997 = dma.vmem_to_hbm [thread:$0]  %s1992_s28, 2048, %s3847_s7, [#allocation15], %s2790_s5, %s2790_s5, %s2792_s17   ;;  %v1130_v10 = vmul.f32 %v3876_v57, %v3875_v49  ;;  %v3878_v21 = vld [vmem:[#allocation34_spill] sm:$0xff]  ;;  %v3879_v33 = vld [vmem:[#allocation27_spill] sm:$0xff]  ;;  %v3880_v40 = vld [vmem:[#allocation32_spill] sm:$0xff] }
 0x379   :  { %v1481_v61 = vmul.f32 %v1398_v55, %v1129_v62  ;;  %v1147_v0 = vmul.f32 %v3878_v21, %v3877_v26  ;;  %v1131_v45 = vmul.f32 %v3880_v40, %v3879_v33  ;;  %v3881_v27 = vld [vmem:[#allocation30_spill] sm:$0xff]  ;;  %v3882_v7 = vld [vmem:[#allocation35_spill] sm:$0xff]  ;;  %v3883_v48 = vld [vmem:[#allocation28_spill] sm:$0xff]  ;;  %s2793_s7 = smov [#allocation13]  }
 0x37a   :  { %v1482_v31 = vmul.f32 %v1400_v56, %v1130_v10  ;;  %v1148_v23 = vmul.f32 %v3882_v7, %v3881_v27  ;;  %v3884_v32 = vld [vmem:[#allocation33_spill] sm:$0xff]  ;;  %s1979_s2 = sshll.u32 %s2793_s7, 4  ;;  %s1980_s2 = int_to_ptr.vmem [resolvable:$true] %s1979_s2 }
 0x37b   :  { %v1430_v3 = vpop.permute.xlu0 %1429  ;;  %v1132_v46 = vmul.f32 %v3884_v32, %v3883_v48  ;;  %s2747_s8 = scalar_lea.vmem %s1980_s2, 1024  ;;  %p2752_p1 = scmp.lt.s32.totalorder %s1980_s2, %s1980_s2 }
 0x37c   :  { %v1497_v14 = vmul.f32 %v1430_v3, %v1145_v39  ;;  %p2748_p0 = scmp.ne.s32.totalorder %s1980_s2, %s2747_s8  ;;  %p2753_p2 = scmp.lt.s32.totalorder %s2747_s8, %s2747_s8 }
 0x37e   :  { %v2219_v47 = vpack.i.bf16 %v1497_v14, %v1481_v61  ;;  %p2754_p3 = por %p2753_p2, %p2752_p1 }
 0x37f   :  { %v1402_v58 = vpop.permute.xlu1 %1401  ;;  %v1432_v35 = vpop.permute.xlu0 %1431 }
 0x380   :  { %v1498_v11 = vmul.f32 %v1432_v35, %v1146_v51  ;;  %2220 = vxpose.xlu1.b32.cont [13/16] (narrow) %v2219_v47, 64  ;;  %v1483_v24 = vmul.f32 %v1402_v58, %v1131_v45  ;;  %p2755_p4 = pnand %p2754_p3, %p2748_p0 }
 0x382   :  { %v2221_v17 = vpack.i.bf16 %v1498_v11, %v1482_v31 }
 0x383   :  { %v1434_v12 = vpop.permute.xlu0 %1433  ;;  %v1404_v52 = vpop.permute.xlu1 %1403 }
 0x384   :  { %v1499_v6 = vmul.f32 %v1434_v12, %v1147_v0  ;;  %2222 = vxpose.xlu1.b32.cont [14/16] (narrow) %v2221_v17, 64  ;;  %v1484_v4 = vmul.f32 %v1404_v52, %v1132_v46 }
 0x386   :  { %v2223_v59 = vpack.i.bf16 %v1499_v6, %v1483_v24 }
 0x387   :  { %v1436_v8 = vpop.permute.xlu0 %1435 }
 0x388   :  { %v1500_v1 = vmul.f32 %v1436_v8, %v1148_v23  ;;  %2224 = vxpose.xlu1.b32.cont [15/16] (narrow) %v2223_v59, 64 }
 0x38a   :  { %v2225_v2 = vpack.i.bf16 %v1500_v1, %v1484_v4 }
 0x38c   :  { %2226 = vxpose.xlu1.b32.end [16/16] (narrow) %v2225_v2, 64 }
 0x3d0   :  { %v2227_v43 = vpop.trf.xlu1 }
 0x3d1   :  { %v2231_v34 = vunpack.i.h.bf16 %v2227_v43  ;;  %v2228_v54 = vunpack.i.l.bf16 %v2227_v43 }
 0x3d3   :  { %v2136_v28 = vpack.c.bf16 %v2231_v34, %v2228_v54 }
 0x3d4   :  { %v2232_v30 = vpop.trf.xlu1 }
 0x3d5   :  { %1613 = vst [vmem:[#allocation13] sm:$0xff] %v2136_v28  ;;  %v2236_v19 = vunpack.i.h.bf16 %v2232_v30  ;;  %v2233_v37 = vunpack.i.l.bf16 %v2232_v30 }
 0x3d7   :  { %v2137_v60 = vpack.c.bf16 %v2236_v19, %v2233_v37 }
 0x3d8   :  { %v2237_v41 = vpop.trf.xlu1 }
 0x3d9   :  { %1614 = vst [vmem:[#allocation13 + $0x8] sm:$0xff] %v2137_v60  ;;  %v2241_v9 = vunpack.i.h.bf16 %v2237_v41  ;;  %v2238_v15 = vunpack.i.l.bf16 %v2237_v41 }
 0x3db   :  { %v2138_v16 = vpack.c.bf16 %v2241_v9, %v2238_v15 }
 0x3dc   :  { %v2242_v29 = vpop.trf.xlu1 }
 0x3dd   :  { %1615 = vst [vmem:[#allocation13 + $0x10] sm:$0xff] %v2138_v16  ;;  %v2246_v50 = vunpack.i.h.bf16 %v2242_v29  ;;  %v2243_v5 = vunpack.i.l.bf16 %v2242_v29 }
 0x3df   :  { %v2139_v53 = vpack.c.bf16 %v2246_v50, %v2243_v5 }
 0x3e0   :  { %v2247_v36 = vpop.trf.xlu1 }
 0x3e1   :  { %1616 = vst [vmem:[#allocation13 + $0x18] sm:$0xff] %v2139_v53  ;;  %v2251_v63 = vunpack.i.h.bf16 %v2247_v36  ;;  %v2248_v42 = vunpack.i.l.bf16 %v2247_v36 }
 0x3e3   :  { %v2140_v44 = vpack.c.bf16 %v2251_v63, %v2248_v42 }
 0x3e4   :  { %v2252_v22 = vpop.trf.xlu1 }
 0x3e5   :  { %1617 = vst [vmem:[#allocation13 + $0x20] sm:$0xff] %v2140_v44  ;;  %v2256_v38 = vunpack.i.h.bf16 %v2252_v22  ;;  %v2253_v18 = vunpack.i.l.bf16 %v2252_v22 }
 0x3e7   :  { %v2141_v13 = vpack.c.bf16 %v2256_v38, %v2253_v18 }
 0x3e8   :  { %v2257_v20 = vpop.trf.xlu1 }
 0x3e9   :  { %1618 = vst [vmem:[#allocation13 + $0x28] sm:$0xff] %v2141_v13  ;;  %v2261_v25 = vunpack.i.h.bf16 %v2257_v20  ;;  %v2258_v55 = vunpack.i.l.bf16 %v2257_v20 }
 0x3eb   :  { %v2142_v56 = vpack.c.bf16 %v2261_v25, %v2258_v55 }
 0x3ec   :  { %v2262_v39 = vpop.trf.xlu1 }
 0x3ed   :  { %1619 = vst [vmem:[#allocation13 + $0x30] sm:$0xff] %v2142_v56  ;;  %v2266_v62 = vunpack.i.h.bf16 %v2262_v39  ;;  %v2263_v3 = vunpack.i.l.bf16 %v2262_v39 }
 0x3ef   :  { %v2143_v61 = vpack.c.bf16 %v2266_v62, %v2263_v3 }
 0x3f1   :  { %1620 = vst [vmem:[#allocation13 + $0x38] sm:$0xff] %v2143_v61 }
 0x3f2   :  { %2758 = shalt.err (!%p2755_p4)
}
 0x3f3   :  { %s2759_s20 = scalar_lea.hbm %s3846_s6, 1024 }
 0x3f4   :  { %p2760_p5 = scmp.ne.s32.totalorder %s3846_s6, %s2759_s20  ;;  %p2763_p6 = scmp.lt.u32.totalorder %s2759_s20, %s3846_s6 }
 0x3f6   :  { %p2765_p7 = pnand %p2763_p6, %p2760_p5 }
 0x3f8   :  { %2768 = shalt.err (!%p2765_p7)
}
 0x3f9   :  { %1985 = dma.vmem_to_hbm [thread:$0]  %s1980_s2, 1024, %s3846_s6, [#allocation4], %s2783_s13, %s2783_s13, %s2784_s14  }
 0x3fa   :  { %2777 = dma.done.wait [#allocation4], 1024  }
 0x3fb   :  { %2778 = vsyncadd [#allocation4], 4294966272 }
 0x3fc   :  { %2779 = dma.done.wait [#allocation15], 2048  }
 0x3fd   :  { %2780 = vsyncadd [#allocation15], 4294965248 }
 0x3fe   :  { %2004 = vsyncpa [#allocation3], 1 }
 0x3ff   :  { %2005 = vsyncpa [#allocation6], 1 }
 0x400   :  { %2006 = vsyncpa [#allocation9], 1 }
 0x401   :  { %2007 = vsyncpa [#allocation12], 1 }
 0x402   :  { %2008 = vsyncpa [#allocation4], 1 }
 0x403   :  { %2009 = vsyncpa [#allocation15], 1 }

</bundles_post_ra>
